<compile_context>
chip_gen: v6e
topology: v6e:2x2x1
jax: 0.10.0
libtpu: 0.0.40
codegen_flags: <defaults>
</compile_context>

<pallas_src>
import jax
import jax.numpy as jnp
from jax.experimental import pallas as pl
from jax.experimental.pallas import tpu as pltpu

IN, H1, H2, H3, OUT = 4, 64, 32, 16, 1

_LANES = 128
_MAX_SLAB = 512   # <=512 lanes keeps the (64, slab) f32 activation at <=32 vregs


def _round_up(x, m):
    return ((x + m - 1) // m) * m


def _make_kernel(tile_b):
    """Kernel factory: tile_b (lane width of one grid step) is a Python constant."""

    def kernel(x_ref,
               w1_ref, b1_ref,
               w2_ref, b2_ref,
               w3_ref, b3_ref,
               w4t_ref, b4_ref,
               o_ref):
        # x_ref: (4, tile_b) batch-on-lanes; weights PyTorch-style (out, in);
        # biases (out, 1); w4t_ref is w4 pre-transposed to (16, 1); o_ref: (1, tile_b).
        w1 = w1_ref[...]          # (64, 4)   f32
        b1 = b1_ref[...]          # (64, 1)   f32
        w2 = w2_ref[...]          # (32, 64)  bf16 (pre-cast in the wrapper)
        b2 = b2_ref[...]          # (32, 1)   f32
        w3 = w3_ref[...]          # (16, 32)  f32
        b3 = b3_ref[...]          # (16, 1)   f32
        w4t = w4t_ref[...]        # (16, 1)   f32
        b4 = b4_ref[...]          # (1, 1)    f32

        # Statically unrolled slab loop: all slice offsets/widths are compile-time
        # constants (multiples of 128), activations of one slab stay vreg-resident.
        off = 0
        while off < tile_b:
            width = min(_MAX_SLAB, tile_b - off)
            xs = x_ref[:, off:off + width]                       # (4, width)

            # layer 1 (4 -> 64): K=4 -> VPU broadcast-FMAs (MXU would be ~3% used).
            h = b1 + w1[:, 0:1] * xs[0:1, :]
            for k in range(1, IN):
                h = h + w1[:, k:k + 1] * xs[k:k + 1, :]
            h = jnp.maximum(h, 0.0)                              # (64, width) f32

            # layer 2 (64 -> 32): the only MXU matmul; bf16 operands, f32 accumulate.
            h = jnp.dot(w2, h.astype(jnp.bfloat16),
                        preferred_element_type=jnp.float32) + b2
            h = jnp.maximum(h, 0.0)                              # (32, width) f32

            # layer 3 (32 -> 16): VPU broadcast-FMAs (a 16x32 stationary tile would
            # waste the MXU but still pay the full column-streaming time).
            a = b3 + w3[:, 0:1] * h[0:1, :]
            for k in range(1, H2):
                a = a + w3[:, k:k + 1] * h[k:k + 1, :]
            a = jnp.maximum(a, 0.0)                              # (16, width) f32

            # layer 4 (16 -> 1): weighted sublane reduction (VPU mul + XLU sum).
            out = jnp.sum(w4t * a, axis=0, keepdims=True) + b4   # (1, width)
            o_ref[:, off:off + width] = out.astype(o_ref.dtype)  # lane-dense store
            off += width

    return kernel


def _tiling(batch, max_tile_b):
    """Balanced, lane-aligned batch tiles; even grid of >=2 steps (v7x has 2 TCs)."""
    b128 = _round_up(max(batch, 1), _LANES)
    n_tiles = max(2, pl.cdiv(b128, max_tile_b))
    if n_tiles % 2:
        n_tiles += 1
    tile_b = _round_up(pl.cdiv(b128, n_tiles), _LANES)
    return n_tiles, tile_b


def critic_forward(x, params, *, max_tile_b=4096):
    """x: (B, 4) feature-last (PyTorch nn.Linear layout).  Returns (B, 1) float32."""
    (w1, b1), (w2, b2), (w3, b3), (w4, b4) = params
    B = x.shape[0]

    n_tiles, tile_b = _tiling(B, max_tile_b)
    b_pad = n_tiles * tile_b

    # Batch-on-lanes layout (4, b_pad); padded columns compute finite garbage and
    # are sliced off below.  allow_input_fusion lets XLA fold this transpose+pad
    # into the pallas_call input when the whole forward is jitted.
    xt = jnp.zeros((IN, b_pad), jnp.float32).at[:, :B].set(x.T.astype(jnp.float32))
    w2b = w2.astype(jnp.bfloat16)   # MXU operand; everything else stays f32 (v5e VPU)
    w4t = w4.T                      # (16, 1) column for the layer-4 sublane reduction

    def resident(shape):  # constant index_map -> DMA'd once, stays resident in VMEM
        return pl.BlockSpec(shape, lambda i: (0, 0))

    operands = (xt, w1, b1, w2b, b2, w3, b3, w4t, b4)
    flops = 2 * b_pad * (IN * H1 + H1 * H2 + H2 * H3 + H3 * OUT)
    bytes_accessed = (b_pad * (IN + OUT) * 4
                      + sum(int(a.size) * a.dtype.itemsize for a in operands[1:]))

    out_t = pl.pallas_call(
        _make_kernel(tile_b),
        out_shape=jax.ShapeDtypeStruct((OUT, b_pad), jnp.float32),
        grid=(n_tiles,),
        in_specs=[
            pl.BlockSpec((IN, tile_b), lambda i: (0, i)),   # x tile, auto-pipelined
            resident((H1, IN)), resident((H1, 1)),
            resident((H2, H1)), resident((H2, 1)),
            resident((H3, H2)), resident((H3, 1)),
            resident((H3, OUT)), resident((OUT, 1)),
        ],
        out_specs=pl.BlockSpec((OUT, tile_b), lambda i: (0, i)),
        compiler_params=pltpu.CompilerParams(
            dimension_semantics=("parallel",),               # v7x: batch over 2 TCs
            allow_input_fusion=[True] + [False] * (len(operands) - 1),
        ),
        cost_estimate=pl.CostEstimate(
            flops=flops, transcendentals=0, bytes_accessed=bytes_accessed),
    )(*operands)

    return out_t[:, :B].T                                    # (B, 1)


def init_params(key):
    """PyTorch nn.Linear-style init: W, b ~ U(-1/sqrt(fan_in), +), W stored (out, in)."""
    sizes = [(IN, H1), (H1, H2), (H2, H3), (H3, OUT)]
    params = []
    for fan_in, fan_out in sizes:
        key, kw, kb = jax.random.split(key, 3)
        bound = 1.0 / jnp.sqrt(float(fan_in))
        w = jax.random.uniform(kw, (fan_out, fan_in), jnp.float32, -bound, bound)
        b = jax.random.uniform(kb, (fan_out, 1), jnp.float32, -bound, bound)
        params.append((w, b))
    return params


def critic_reference(x, params, *, bf16_layer2=False):
    """Pure-JAX reference.  bf16_layer2=True mirrors the kernel's MXU numerics."""
    (w1, b1), (w2, b2), (w3, b3), (w4, b4) = params
    h = jnp.maximum(x @ w1.T + b1.T, 0.0)
    if bf16_layer2:
        h = jnp.dot(h.astype(jnp.bfloat16), w2.T.astype(jnp.bfloat16),
                    preferred_element_type=jnp.float32) + b2.T
    else:
        h = h @ w2.T + b2.T
    h = jnp.maximum(h, 0.0)
    h = jnp.maximum(h @ w3.T + b3.T, 0.0)
    return h @ w4.T + b4.T


if __name__ == "__main__":
    key = jax.random.PRNGKey(0)
    key, kx1, kx2 = jax.random.split(key, 3)
    params = init_params(key)

    fwd = jax.jit(critic_forward)  # jit so the pad/transpose can fuse into the call

    # Small batch (CartPole state dim = 4) — primary check.
    # Larger batch exercises the multi-tile / multi-slab paths (still tiny data).
    for kx, batch in ((kx1, 8), (kx2, 2048)):
        x = jax.random.normal(kx, (batch, IN), jnp.float32)
        out = jax.block_until_ready(fwd(x, params))
        assert out.shape == (batch, 1)

        # Tight check vs a reference with identical bf16-layer-2 numerics ...
        ref_bf16 = critic_reference(x, params, bf16_layer2=True)
        assert jnp.allclose(out, ref_bf16, atol=1e-3, rtol=1e-3)
        # ... and a loose check vs the exact f32 PyTorch-equivalent forward
        # (tolerance widened per review because layer 2 runs in bf16 on the MXU).
        ref_f32 = critic_reference(x, params)
        assert jnp.allclose(out, ref_f32, atol=2e-2, rtol=2e-2)

    print("KERNEL_OK")
</pallas_src>

<mosaic_0001>
module attributes {stable_mosaic.version = 11 : i64} {
  func.func @kernel(%arg0: i32, %arg1: memref<4x128xf32, #tpu.memory_space<vmem>>, %arg2: memref<64x4xf32, #tpu.memory_space<vmem>>, %arg3: memref<64x1xf32, #tpu.memory_space<vmem>>, %arg4: memref<32x64xbf16, #tpu.memory_space<vmem>>, %arg5: memref<32x1xf32, #tpu.memory_space<vmem>>, %arg6: memref<16x32xf32, #tpu.memory_space<vmem>>, %arg7: memref<16x1xf32, #tpu.memory_space<vmem>>, %arg8: memref<16x1xf32, #tpu.memory_space<vmem>>, %arg9: memref<1x1xf32, #tpu.memory_space<vmem>>, %arg10: memref<1x128xf32, #tpu.memory_space<vmem>>) attributes {dimension_semantics = [#tpu.dimension_semantics<parallel>], iteration_bounds = array<i64: 2>, scalar_prefetch = 0 : i64, scratch_operands = 0 : i64, tpu.core_type = #tpu.core_type<tc>, window_params = [{transform_indices = @transform_0, window_bounds = array<i64: 4, 128>}, {pipeline_mode = #tpu.pipeline_mode<synchronous>, transform_indices = @transform_1, window_bounds = array<i64: 64, 4>}, {pipeline_mode = #tpu.pipeline_mode<synchronous>, transform_indices = @transform_2, window_bounds = array<i64: 64, 1>}, {pipeline_mode = #tpu.pipeline_mode<synchronous>, transform_indices = @transform_3, window_bounds = array<i64: 32, 64>}, {pipeline_mode = #tpu.pipeline_mode<synchronous>, transform_indices = @transform_4, window_bounds = array<i64: 32, 1>}, {pipeline_mode = #tpu.pipeline_mode<synchronous>, transform_indices = @transform_5, window_bounds = array<i64: 16, 32>}, {pipeline_mode = #tpu.pipeline_mode<synchronous>, transform_indices = @transform_6, window_bounds = array<i64: 16, 1>}, {pipeline_mode = #tpu.pipeline_mode<synchronous>, transform_indices = @transform_7, window_bounds = array<i64: 16, 1>}, {pipeline_mode = #tpu.pipeline_mode<synchronous>, transform_indices = @transform_8, window_bounds = array<i64: 1, 1>}, {transform_indices = @transform_9, window_bounds = array<i64: 1, 128>}]} {
    %c0 = arith.constant 0 : index
    %c0_0 = arith.constant 0 : index
    %0 = vector.load %arg2[%c0, %c0_0] : memref<64x4xf32, #tpu.memory_space<vmem>>, vector<64x4xf32>
    %c0_1 = arith.constant 0 : index
    %c0_2 = arith.constant 0 : index
    %1 = vector.load %arg3[%c0_1, %c0_2] : memref<64x1xf32, #tpu.memory_space<vmem>>, vector<64x1xf32>
    %c0_3 = arith.constant 0 : index
    %c0_4 = arith.constant 0 : index
    %2 = vector.load %arg4[%c0_3, %c0_4] : memref<32x64xbf16, #tpu.memory_space<vmem>>, vector<32x64xbf16>
    %c0_5 = arith.constant 0 : index
    %c0_6 = arith.constant 0 : index
    %3 = vector.load %arg5[%c0_5, %c0_6] : memref<32x1xf32, #tpu.memory_space<vmem>>, vector<32x1xf32>
    %c0_7 = arith.constant 0 : index
    %c0_8 = arith.constant 0 : index
    %4 = vector.load %arg6[%c0_7, %c0_8] : memref<16x32xf32, #tpu.memory_space<vmem>>, vector<16x32xf32>
    %c0_9 = arith.constant 0 : index
    %c0_10 = arith.constant 0 : index
    %5 = vector.load %arg7[%c0_9, %c0_10] : memref<16x1xf32, #tpu.memory_space<vmem>>, vector<16x1xf32>
    %c0_11 = arith.constant 0 : index
    %c0_12 = arith.constant 0 : index
    %6 = vector.load %arg8[%c0_11, %c0_12] : memref<16x1xf32, #tpu.memory_space<vmem>>, vector<16x1xf32>
    %c0_13 = arith.constant 0 : index
    %c0_14 = arith.constant 0 : index
    %7 = vector.load %arg9[%c0_13, %c0_14] : memref<1x1xf32, #tpu.memory_space<vmem>>, vector<1x1xf32>
    %c0_15 = arith.constant 0 : index
    %c0_16 = arith.constant 0 : index
    %8 = vector.load %arg1[%c0_15, %c0_16] : memref<4x128xf32, #tpu.memory_space<vmem>>, vector<4x128xf32>
    %9 = vector.extract_strided_slice %0 {offsets = [0, 0], sizes = [64, 1], strides = [1, 1]} : vector<64x4xf32> to vector<64x1xf32>
    %10 = vector.extract_strided_slice %8 {offsets = [0, 0], sizes = [1, 128], strides = [1, 1]} : vector<4x128xf32> to vector<1x128xf32>
    %11 = vector.broadcast %9 : vector<64x1xf32> to vector<64x128xf32>
    %12 = vector.broadcast %10 : vector<1x128xf32> to vector<64x128xf32>
    %13 = arith.mulf %11, %12 : vector<64x128xf32>
    %14 = vector.broadcast %1 : vector<64x1xf32> to vector<64x128xf32>
    %15 = arith.addf %14, %13 : vector<64x128xf32>
    %16 = vector.extract_strided_slice %0 {offsets = [0, 1], sizes = [64, 1], strides = [1, 1]} : vector<64x4xf32> to vector<64x1xf32>
    %17 = vector.extract_strided_slice %8 {offsets = [1, 0], sizes = [1, 128], strides = [1, 1]} : vector<4x128xf32> to vector<1x128xf32>
    %18 = vector.broadcast %16 : vector<64x1xf32> to vector<64x128xf32>
    %19 = vector.broadcast %17 : vector<1x128xf32> to vector<64x128xf32>
    %20 = arith.mulf %18, %19 : vector<64x128xf32>
    %21 = arith.addf %15, %20 : vector<64x128xf32>
    %22 = vector.extract_strided_slice %0 {offsets = [0, 2], sizes = [64, 1], strides = [1, 1]} : vector<64x4xf32> to vector<64x1xf32>
    %23 = vector.extract_strided_slice %8 {offsets = [2, 0], sizes = [1, 128], strides = [1, 1]} : vector<4x128xf32> to vector<1x128xf32>
    %24 = vector.broadcast %22 : vector<64x1xf32> to vector<64x128xf32>
    %25 = vector.broadcast %23 : vector<1x128xf32> to vector<64x128xf32>
    %26 = arith.mulf %24, %25 : vector<64x128xf32>
    %27 = arith.addf %21, %26 : vector<64x128xf32>
    %28 = vector.extract_strided_slice %0 {offsets = [0, 3], sizes = [64, 1], strides = [1, 1]} : vector<64x4xf32> to vector<64x1xf32>
    %29 = vector.extract_strided_slice %8 {offsets = [3, 0], sizes = [1, 128], strides = [1, 1]} : vector<4x128xf32> to vector<1x128xf32>
    %30 = vector.broadcast %28 : vector<64x1xf32> to vector<64x128xf32>
    %31 = vector.broadcast %29 : vector<1x128xf32> to vector<64x128xf32>
    %32 = arith.mulf %30, %31 : vector<64x128xf32>
    %33 = arith.addf %27, %32 : vector<64x128xf32>
    %cst = arith.constant 0.000000e+00 : f32
    %34 = vector.broadcast %cst : f32 to vector<64x128xf32>
    %35 = arith.maximumf %33, %34 : vector<64x128xf32>
    %36 = arith.truncf %35 : vector<64x128xf32> to vector<64x128xbf16>
    %cst_17 = arith.constant dense<0.000000e+00> : vector<32x128xf32>
    %37 = tpu.matmul %2, %36, %cst_17 {dimension_numbers = #tpu.dot_dimension_numbers<[1], [0], [0], [1], [0, 0, 1, 1], [], []>} : vector<32x64xbf16>, vector<64x128xbf16>, vector<32x128xf32> -> vector<32x128xf32>
    %38 = vector.broadcast %3 : vector<32x1xf32> to vector<32x128xf32>
    %39 = arith.addf %37, %38 : vector<32x128xf32>
    %cst_18 = arith.constant 0.000000e+00 : f32
    %40 = vector.broadcast %cst_18 : f32 to vector<32x128xf32>
    %41 = arith.maximumf %39, %40 : vector<32x128xf32>
    %42 = vector.extract_strided_slice %4 {offsets = [0, 0], sizes = [16, 1], strides = [1, 1]} : vector<16x32xf32> to vector<16x1xf32>
    %43 = vector.extract_strided_slice %41 {offsets = [0, 0], sizes = [1, 128], strides = [1, 1]} : vector<32x128xf32> to vector<1x128xf32>
    %44 = vector.broadcast %42 : vector<16x1xf32> to vector<16x128xf32>
    %45 = vector.broadcast %43 : vector<1x128xf32> to vector<16x128xf32>
    %46 = arith.mulf %44, %45 : vector<16x128xf32>
    %47 = vector.broadcast %5 : vector<16x1xf32> to vector<16x128xf32>
    %48 = arith.addf %47, %46 : vector<16x128xf32>
    %49 = vector.extract_strided_slice %4 {offsets = [0, 1], sizes = [16, 1], strides = [1, 1]} : vector<16x32xf32> to vector<16x1xf32>
    %50 = vector.extract_strided_slice %41 {offsets = [1, 0], sizes = [1, 128], strides = [1, 1]} : vector<32x128xf32> to vector<1x128xf32>
    %51 = vector.broadcast %49 : vector<16x1xf32> to vector<16x128xf32>
    %52 = vector.broadcast %50 : vector<1x128xf32> to vector<16x128xf32>
    %53 = arith.mulf %51, %52 : vector<16x128xf32>
    %54 = arith.addf %48, %53 : vector<16x128xf32>
    %55 = vector.extract_strided_slice %4 {offsets = [0, 2], sizes = [16, 1], strides = [1, 1]} : vector<16x32xf32> to vector<16x1xf32>
    %56 = vector.extract_strided_slice %41 {offsets = [2, 0], sizes = [1, 128], strides = [1, 1]} : vector<32x128xf32> to vector<1x128xf32>
    %57 = vector.broadcast %55 : vector<16x1xf32> to vector<16x128xf32>
    %58 = vector.broadcast %56 : vector<1x128xf32> to vector<16x128xf32>
    %59 = arith.mulf %57, %58 : vector<16x128xf32>
    %60 = arith.addf %54, %59 : vector<16x128xf32>
    %61 = vector.extract_strided_slice %4 {offsets = [0, 3], sizes = [16, 1], strides = [1, 1]} : vector<16x32xf32> to vector<16x1xf32>
    %62 = vector.extract_strided_slice %41 {offsets = [3, 0], sizes = [1, 128], strides = [1, 1]} : vector<32x128xf32> to vector<1x128xf32>
    %63 = vector.broadcast %61 : vector<16x1xf32> to vector<16x128xf32>
    %64 = vector.broadcast %62 : vector<1x128xf32> to vector<16x128xf32>
    %65 = arith.mulf %63, %64 : vector<16x128xf32>
    %66 = arith.addf %60, %65 : vector<16x128xf32>
    %67 = vector.extract_strided_slice %4 {offsets = [0, 4], sizes = [16, 1], strides = [1, 1]} : vector<16x32xf32> to vector<16x1xf32>
    %68 = vector.extract_strided_slice %41 {offsets = [4, 0], sizes = [1, 128], strides = [1, 1]} : vector<32x128xf32> to vector<1x128xf32>
    %69 = vector.broadcast %67 : vector<16x1xf32> to vector<16x128xf32>
    %70 = vector.broadcast %68 : vector<1x128xf32> to vector<16x128xf32>
    %71 = arith.mulf %69, %70 : vector<16x128xf32>
    %72 = arith.addf %66, %71 : vector<16x128xf32>
    %73 = vector.extract_strided_slice %4 {offsets = [0, 5], sizes = [16, 1], strides = [1, 1]} : vector<16x32xf32> to vector<16x1xf32>
    %74 = vector.extract_strided_slice %41 {offsets = [5, 0], sizes = [1, 128], strides = [1, 1]} : vector<32x128xf32> to vector<1x128xf32>
    %75 = vector.broadcast %73 : vector<16x1xf32> to vector<16x128xf32>
    %76 = vector.broadcast %74 : vector<1x128xf32> to vector<16x128xf32>
    %77 = arith.mulf %75, %76 : vector<16x128xf32>
    %78 = arith.addf %72, %77 : vector<16x128xf32>
    %79 = vector.extract_strided_slice %4 {offsets = [0, 6], sizes = [16, 1], strides = [1, 1]} : vector<16x32xf32> to vector<16x1xf32>
    %80 = vector.extract_strided_slice %41 {offsets = [6, 0], sizes = [1, 128], strides = [1, 1]} : vector<32x128xf32> to vector<1x128xf32>
    %81 = vector.broadcast %79 : vector<16x1xf32> to vector<16x128xf32>
    %82 = vector.broadcast %80 : vector<1x128xf32> to vector<16x128xf32>
    %83 = arith.mulf %81, %82 : vector<16x128xf32>
    %84 = arith.addf %78, %83 : vector<16x128xf32>
    %85 = vector.extract_strided_slice %4 {offsets = [0, 7], sizes = [16, 1], strides = [1, 1]} : vector<16x32xf32> to vector<16x1xf32>
    %86 = vector.extract_strided_slice %41 {offsets = [7, 0], sizes = [1, 128], strides = [1, 1]} : vector<32x128xf32> to vector<1x128xf32>
    %87 = vector.broadcast %85 : vector<16x1xf32> to vector<16x128xf32>
    %88 = vector.broadcast %86 : vector<1x128xf32> to vector<16x128xf32>
    %89 = arith.mulf %87, %88 : vector<16x128xf32>
    %90 = arith.addf %84, %89 : vector<16x128xf32>
    %91 = vector.extract_strided_slice %4 {offsets = [0, 8], sizes = [16, 1], strides = [1, 1]} : vector<16x32xf32> to vector<16x1xf32>
    %92 = vector.extract_strided_slice %41 {offsets = [8, 0], sizes = [1, 128], strides = [1, 1]} : vector<32x128xf32> to vector<1x128xf32>
    %93 = vector.broadcast %91 : vector<16x1xf32> to vector<16x128xf32>
    %94 = vector.broadcast %92 : vector<1x128xf32> to vector<16x128xf32>
    %95 = arith.mulf %93, %94 : vector<16x128xf32>
    %96 = arith.addf %90, %95 : vector<16x128xf32>
    %97 = vector.extract_strided_slice %4 {offsets = [0, 9], sizes = [16, 1], strides = [1, 1]} : vector<16x32xf32> to vector<16x1xf32>
    %98 = vector.extract_strided_slice %41 {offsets = [9, 0], sizes = [1, 128], strides = [1, 1]} : vector<32x128xf32> to vector<1x128xf32>
    %99 = vector.broadcast %97 : vector<16x1xf32> to vector<16x128xf32>
    %100 = vector.broadcast %98 : vector<1x128xf32> to vector<16x128xf32>
    %101 = arith.mulf %99, %100 : vector<16x128xf32>
    %102 = arith.addf %96, %101 : vector<16x128xf32>
    %103 = vector.extract_strided_slice %4 {offsets = [0, 10], sizes = [16, 1], strides = [1, 1]} : vector<16x32xf32> to vector<16x1xf32>
    %104 = vector.extract_strided_slice %41 {offsets = [10, 0], sizes = [1, 128], strides = [1, 1]} : vector<32x128xf32> to vector<1x128xf32>
    %105 = vector.broadcast %103 : vector<16x1xf32> to vector<16x128xf32>
    %106 = vector.broadcast %104 : vector<1x128xf32> to vector<16x128xf32>
    %107 = arith.mulf %105, %106 : vector<16x128xf32>
    %108 = arith.addf %102, %107 : vector<16x128xf32>
    %109 = vector.extract_strided_slice %4 {offsets = [0, 11], sizes = [16, 1], strides = [1, 1]} : vector<16x32xf32> to vector<16x1xf32>
    %110 = vector.extract_strided_slice %41 {offsets = [11, 0], sizes = [1, 128], strides = [1, 1]} : vector<32x128xf32> to vector<1x128xf32>
    %111 = vector.broadcast %109 : vector<16x1xf32> to vector<16x128xf32>
    %112 = vector.broadcast %110 : vector<1x128xf32> to vector<16x128xf32>
    %113 = arith.mulf %111, %112 : vector<16x128xf32>
    %114 = arith.addf %108, %113 : vector<16x128xf32>
    %115 = vector.extract_strided_slice %4 {offsets = [0, 12], sizes = [16, 1], strides = [1, 1]} : vector<16x32xf32> to vector<16x1xf32>
    %116 = vector.extract_strided_slice %41 {offsets = [12, 0], sizes = [1, 128], strides = [1, 1]} : vector<32x128xf32> to vector<1x128xf32>
    %117 = vector.broadcast %115 : vector<16x1xf32> to vector<16x128xf32>
    %118 = vector.broadcast %116 : vector<1x128xf32> to vector<16x128xf32>
    %119 = arith.mulf %117, %118 : vector<16x128xf32>
    %120 = arith.addf %114, %119 : vector<16x128xf32>
    %121 = vector.extract_strided_slice %4 {offsets = [0, 13], sizes = [16, 1], strides = [1, 1]} : vector<16x32xf32> to vector<16x1xf32>
    %122 = vector.extract_strided_slice %41 {offsets = [13, 0], sizes = [1, 128], strides = [1, 1]} : vector<32x128xf32> to vector<1x128xf32>
    %123 = vector.broadcast %121 : vector<16x1xf32> to vector<16x128xf32>
    %124 = vector.broadcast %122 : vector<1x128xf32> to vector<16x128xf32>
    %125 = arith.mulf %123, %124 : vector<16x128xf32>
    %126 = arith.addf %120, %125 : vector<16x128xf32>
    %127 = vector.extract_strided_slice %4 {offsets = [0, 14], sizes = [16, 1], strides = [1, 1]} : vector<16x32xf32> to vector<16x1xf32>
    %128 = vector.extract_strided_slice %41 {offsets = [14, 0], sizes = [1, 128], strides = [1, 1]} : vector<32x128xf32> to vector<1x128xf32>
    %129 = vector.broadcast %127 : vector<16x1xf32> to vector<16x128xf32>
    %130 = vector.broadcast %128 : vector<1x128xf32> to vector<16x128xf32>
    %131 = arith.mulf %129, %130 : vector<16x128xf32>
    %132 = arith.addf %126, %131 : vector<16x128xf32>
    %133 = vector.extract_strided_slice %4 {offsets = [0, 15], sizes = [16, 1], strides = [1, 1]} : vector<16x32xf32> to vector<16x1xf32>
    %134 = vector.extract_strided_slice %41 {offsets = [15, 0], sizes = [1, 128], strides = [1, 1]} : vector<32x128xf32> to vector<1x128xf32>
    %135 = vector.broadcast %133 : vector<16x1xf32> to vector<16x128xf32>
    %136 = vector.broadcast %134 : vector<1x128xf32> to vector<16x128xf32>
    %137 = arith.mulf %135, %136 : vector<16x128xf32>
    %138 = arith.addf %132, %137 : vector<16x128xf32>
    %139 = vector.extract_strided_slice %4 {offsets = [0, 16], sizes = [16, 1], strides = [1, 1]} : vector<16x32xf32> to vector<16x1xf32>
    %140 = vector.extract_strided_slice %41 {offsets = [16, 0], sizes = [1, 128], strides = [1, 1]} : vector<32x128xf32> to vector<1x128xf32>
    %141 = vector.broadcast %139 : vector<16x1xf32> to vector<16x128xf32>
    %142 = vector.broadcast %140 : vector<1x128xf32> to vector<16x128xf32>
    %143 = arith.mulf %141, %142 : vector<16x128xf32>
    %144 = arith.addf %138, %143 : vector<16x128xf32>
    %145 = vector.extract_strided_slice %4 {offsets = [0, 17], sizes = [16, 1], strides = [1, 1]} : vector<16x32xf32> to vector<16x1xf32>
    %146 = vector.extract_strided_slice %41 {offsets = [17, 0], sizes = [1, 128], strides = [1, 1]} : vector<32x128xf32> to vector<1x128xf32>
    %147 = vector.broadcast %145 : vector<16x1xf32> to vector<16x128xf32>
    %148 = vector.broadcast %146 : vector<1x128xf32> to vector<16x128xf32>
    %149 = arith.mulf %147, %148 : vector<16x128xf32>
    %150 = arith.addf %144, %149 : vector<16x128xf32>
    %151 = vector.extract_strided_slice %4 {offsets = [0, 18], sizes = [16, 1], strides = [1, 1]} : vector<16x32xf32> to vector<16x1xf32>
    %152 = vector.extract_strided_slice %41 {offsets = [18, 0], sizes = [1, 128], strides = [1, 1]} : vector<32x128xf32> to vector<1x128xf32>
    %153 = vector.broadcast %151 : vector<16x1xf32> to vector<16x128xf32>
    %154 = vector.broadcast %152 : vector<1x128xf32> to vector<16x128xf32>
    %155 = arith.mulf %153, %154 : vector<16x128xf32>
    %156 = arith.addf %150, %155 : vector<16x128xf32>
    %157 = vector.extract_strided_slice %4 {offsets = [0, 19], sizes = [16, 1], strides = [1, 1]} : vector<16x32xf32> to vector<16x1xf32>
    %158 = vector.extract_strided_slice %41 {offsets = [19, 0], sizes = [1, 128], strides = [1, 1]} : vector<32x128xf32> to vector<1x128xf32>
    %159 = vector.broadcast %157 : vector<16x1xf32> to vector<16x128xf32>
    %160 = vector.broadcast %158 : vector<1x128xf32> to vector<16x128xf32>
    %161 = arith.mulf %159, %160 : vector<16x128xf32>
    %162 = arith.addf %156, %161 : vector<16x128xf32>
    %163 = vector.extract_strided_slice %4 {offsets = [0, 20], sizes = [16, 1], strides = [1, 1]} : vector<16x32xf32> to vector<16x1xf32>
    %164 = vector.extract_strided_slice %41 {offsets = [20, 0], sizes = [1, 128], strides = [1, 1]} : vector<32x128xf32> to vector<1x128xf32>
    %165 = vector.broadcast %163 : vector<16x1xf32> to vector<16x128xf32>
    %166 = vector.broadcast %164 : vector<1x128xf32> to vector<16x128xf32>
    %167 = arith.mulf %165, %166 : vector<16x128xf32>
    %168 = arith.addf %162, %167 : vector<16x128xf32>
    %169 = vector.extract_strided_slice %4 {offsets = [0, 21], sizes = [16, 1], strides = [1, 1]} : vector<16x32xf32> to vector<16x1xf32>
    %170 = vector.extract_strided_slice %41 {offsets = [21, 0], sizes = [1, 128], strides = [1, 1]} : vector<32x128xf32> to vector<1x128xf32>
    %171 = vector.broadcast %169 : vector<16x1xf32> to vector<16x128xf32>
    %172 = vector.broadcast %170 : vector<1x128xf32> to vector<16x128xf32>
    %173 = arith.mulf %171, %172 : vector<16x128xf32>
    %174 = arith.addf %168, %173 : vector<16x128xf32>
    %175 = vector.extract_strided_slice %4 {offsets = [0, 22], sizes = [16, 1], strides = [1, 1]} : vector<16x32xf32> to vector<16x1xf32>
    %176 = vector.extract_strided_slice %41 {offsets = [22, 0], sizes = [1, 128], strides = [1, 1]} : vector<32x128xf32> to vector<1x128xf32>
    %177 = vector.broadcast %175 : vector<16x1xf32> to vector<16x128xf32>
    %178 = vector.broadcast %176 : vector<1x128xf32> to vector<16x128xf32>
    %179 = arith.mulf %177, %178 : vector<16x128xf32>
    %180 = arith.addf %174, %179 : vector<16x128xf32>
    %181 = vector.extract_strided_slice %4 {offsets = [0, 23], sizes = [16, 1], strides = [1, 1]} : vector<16x32xf32> to vector<16x1xf32>
    %182 = vector.extract_strided_slice %41 {offsets = [23, 0], sizes = [1, 128], strides = [1, 1]} : vector<32x128xf32> to vector<1x128xf32>
    %183 = vector.broadcast %181 : vector<16x1xf32> to vector<16x128xf32>
    %184 = vector.broadcast %182 : vector<1x128xf32> to vector<16x128xf32>
    %185 = arith.mulf %183, %184 : vector<16x128xf32>
    %186 = arith.addf %180, %185 : vector<16x128xf32>
    %187 = vector.extract_strided_slice %4 {offsets = [0, 24], sizes = [16, 1], strides = [1, 1]} : vector<16x32xf32> to vector<16x1xf32>
    %188 = vector.extract_strided_slice %41 {offsets = [24, 0], sizes = [1, 128], strides = [1, 1]} : vector<32x128xf32> to vector<1x128xf32>
    %189 = vector.broadcast %187 : vector<16x1xf32> to vector<16x128xf32>
    %190 = vector.broadcast %188 : vector<1x128xf32> to vector<16x128xf32>
    %191 = arith.mulf %189, %190 : vector<16x128xf32>
    %192 = arith.addf %186, %191 : vector<16x128xf32>
    %193 = vector.extract_strided_slice %4 {offsets = [0, 25], sizes = [16, 1], strides = [1, 1]} : vector<16x32xf32> to vector<16x1xf32>
    %194 = vector.extract_strided_slice %41 {offsets = [25, 0], sizes = [1, 128], strides = [1, 1]} : vector<32x128xf32> to vector<1x128xf32>
    %195 = vector.broadcast %193 : vector<16x1xf32> to vector<16x128xf32>
    %196 = vector.broadcast %194 : vector<1x128xf32> to vector<16x128xf32>
    %197 = arith.mulf %195, %196 : vector<16x128xf32>
    %198 = arith.addf %192, %197 : vector<16x128xf32>
    %199 = vector.extract_strided_slice %4 {offsets = [0, 26], sizes = [16, 1], strides = [1, 1]} : vector<16x32xf32> to vector<16x1xf32>
    %200 = vector.extract_strided_slice %41 {offsets = [26, 0], sizes = [1, 128], strides = [1, 1]} : vector<32x128xf32> to vector<1x128xf32>
    %201 = vector.broadcast %199 : vector<16x1xf32> to vector<16x128xf32>
    %202 = vector.broadcast %200 : vector<1x128xf32> to vector<16x128xf32>
    %203 = arith.mulf %201, %202 : vector<16x128xf32>
    %204 = arith.addf %198, %203 : vector<16x128xf32>
    %205 = vector.extract_strided_slice %4 {offsets = [0, 27], sizes = [16, 1], strides = [1, 1]} : vector<16x32xf32> to vector<16x1xf32>
    %206 = vector.extract_strided_slice %41 {offsets = [27, 0], sizes = [1, 128], strides = [1, 1]} : vector<32x128xf32> to vector<1x128xf32>
    %207 = vector.broadcast %205 : vector<16x1xf32> to vector<16x128xf32>
    %208 = vector.broadcast %206 : vector<1x128xf32> to vector<16x128xf32>
    %209 = arith.mulf %207, %208 : vector<16x128xf32>
    %210 = arith.addf %204, %209 : vector<16x128xf32>
    %211 = vector.extract_strided_slice %4 {offsets = [0, 28], sizes = [16, 1], strides = [1, 1]} : vector<16x32xf32> to vector<16x1xf32>
    %212 = vector.extract_strided_slice %41 {offsets = [28, 0], sizes = [1, 128], strides = [1, 1]} : vector<32x128xf32> to vector<1x128xf32>
    %213 = vector.broadcast %211 : vector<16x1xf32> to vector<16x128xf32>
    %214 = vector.broadcast %212 : vector<1x128xf32> to vector<16x128xf32>
    %215 = arith.mulf %213, %214 : vector<16x128xf32>
    %216 = arith.addf %210, %215 : vector<16x128xf32>
    %217 = vector.extract_strided_slice %4 {offsets = [0, 29], sizes = [16, 1], strides = [1, 1]} : vector<16x32xf32> to vector<16x1xf32>
    %218 = vector.extract_strided_slice %41 {offsets = [29, 0], sizes = [1, 128], strides = [1, 1]} : vector<32x128xf32> to vector<1x128xf32>
    %219 = vector.broadcast %217 : vector<16x1xf32> to vector<16x128xf32>
    %220 = vector.broadcast %218 : vector<1x128xf32> to vector<16x128xf32>
    %221 = arith.mulf %219, %220 : vector<16x128xf32>
    %222 = arith.addf %216, %221 : vector<16x128xf32>
    %223 = vector.extract_strided_slice %4 {offsets = [0, 30], sizes = [16, 1], strides = [1, 1]} : vector<16x32xf32> to vector<16x1xf32>
    %224 = vector.extract_strided_slice %41 {offsets = [30, 0], sizes = [1, 128], strides = [1, 1]} : vector<32x128xf32> to vector<1x128xf32>
    %225 = vector.broadcast %223 : vector<16x1xf32> to vector<16x128xf32>
    %226 = vector.broadcast %224 : vector<1x128xf32> to vector<16x128xf32>
    %227 = arith.mulf %225, %226 : vector<16x128xf32>
    %228 = arith.addf %222, %227 : vector<16x128xf32>
    %229 = vector.extract_strided_slice %4 {offsets = [0, 31], sizes = [16, 1], strides = [1, 1]} : vector<16x32xf32> to vector<16x1xf32>
    %230 = vector.extract_strided_slice %41 {offsets = [31, 0], sizes = [1, 128], strides = [1, 1]} : vector<32x128xf32> to vector<1x128xf32>
    %231 = vector.broadcast %229 : vector<16x1xf32> to vector<16x128xf32>
    %232 = vector.broadcast %230 : vector<1x128xf32> to vector<16x128xf32>
    %233 = arith.mulf %231, %232 : vector<16x128xf32>
    %234 = arith.addf %228, %233 : vector<16x128xf32>
    %cst_19 = arith.constant 0.000000e+00 : f32
    %235 = vector.broadcast %cst_19 : f32 to vector<16x128xf32>
    %236 = arith.maximumf %234, %235 : vector<16x128xf32>
    %237 = vector.broadcast %6 : vector<16x1xf32> to vector<16x128xf32>
    %238 = arith.mulf %237, %236 : vector<16x128xf32>
    %cst_20 = arith.constant dense<0.000000e+00> : vector<128xf32>
    %239 = vector.multi_reduction <add>, %238, %cst_20 [0] : vector<16x128xf32> to vector<128xf32>
    %240 = vector.shape_cast %239 : vector<128xf32> to vector<1x128xf32>
    %241 = vector.broadcast %7 : vector<1x1xf32> to vector<1x128xf32>
    %242 = arith.addf %240, %241 : vector<1x128xf32>
    %c0_21 = arith.constant 0 : index
    %c0_22 = arith.constant 0 : index
    %243 = vector.load %arg10[%c0_21, %c0_22] : memref<1x128xf32, #tpu.memory_space<vmem>>, vector<1x128xf32>
    tpu.vector_store %arg10[%c0_21, %c0_22], %242 {strides = array<i32>} : memref<1x128xf32, #tpu.memory_space<vmem>>, vector<1x128xf32>,
    return
  }
  func.func @transform_0(%arg0: i32) -> (i32, i32) {
    %c0_i32 = arith.constant 0 : i32
    %c0_i32_0 = arith.constant 0 : i32
    return %c0_i32, %arg0 : i32, i32
  }
  func.func @transform_1(%arg0: i32) -> (i32, i32) {
    %c0_i32 = arith.constant 0 : i32
    %c0_i32_0 = arith.constant 0 : i32
    %c0_i32_1 = arith.constant 0 : i32
    return %c0_i32, %c0_i32_0 : i32, i32
  }
  func.func @transform_2(%arg0: i32) -> (i32, i32) {
    %c0_i32 = arith.constant 0 : i32
    %c0_i32_0 = arith.constant 0 : i32
    %c0_i32_1 = arith.constant 0 : i32
    return %c0_i32, %c0_i32_0 : i32, i32
  }
  func.func @transform_3(%arg0: i32) -> (i32, i32) {
    %c0_i32 = arith.constant 0 : i32
    %c0_i32_0 = arith.constant 0 : i32
    %c0_i32_1 = arith.constant 0 : i32
    return %c0_i32, %c0_i32_0 : i32, i32
  }
  func.func @transform_4(%arg0: i32) -> (i32, i32) {
    %c0_i32 = arith.constant 0 : i32
    %c0_i32_0 = arith.constant 0 : i32
    %c0_i32_1 = arith.constant 0 : i32
    return %c0_i32, %c0_i32_0 : i32, i32
  }
  func.func @transform_5(%arg0: i32) -> (i32, i32) {
    %c0_i32 = arith.constant 0 : i32
    %c0_i32_0 = arith.constant 0 : i32
    %c0_i32_1 = arith.constant 0 : i32
    return %c0_i32, %c0_i32_0 : i32, i32
  }
  func.func @transform_6(%arg0: i32) -> (i32, i32) {
    %c0_i32 = arith.constant 0 : i32
    %c0_i32_0 = arith.constant 0 : i32
    %c0_i32_1 = arith.constant 0 : i32
    return %c0_i32, %c0_i32_0 : i32, i32
  }
  func.func @transform_7(%arg0: i32) -> (i32, i32) {
    %c0_i32 = arith.constant 0 : i32
    %c0_i32_0 = arith.constant 0 : i32
    %c0_i32_1 = arith.constant 0 : i32
    return %c0_i32, %c0_i32_0 : i32, i32
  }
  func.func @transform_8(%arg0: i32) -> (i32, i32) {
    %c0_i32 = arith.constant 0 : i32
    %c0_i32_0 = arith.constant 0 : i32
    %c0_i32_1 = arith.constant 0 : i32
    return %c0_i32, %c0_i32_0 : i32, i32
  }
  func.func @transform_9(%arg0: i32) -> (i32, i32) {
    %c0_i32 = arith.constant 0 : i32
    %c0_i32_0 = arith.constant 0 : i32
    return %c0_i32, %arg0 : i32, i32
  }
}

</mosaic_0001>

<bundles_post_ra>
// kernel: critic_forward.2
= control target key start
LH: loop header
LB: loop body
LE: loop exit
PB: predicated region body
PF: predicated region fallthrough
CT: control target
= control target key end

     0   :  { %s1618_s17 = smov 0   ;;  %s2223_s0 = inlined_call_operand.vmem [shape: f32[64,4], index: 0, kind: input, shape index: {}]   ;;  %s2224_s1 = inlined_call_operand.vmem [shape: f32[64,1], index: 1, kind: input, shape index: {}]   ;;  %s2225_s2 = inlined_call_operand.vmem [shape: bf16[32,64], index: 2, kind: input, shape index: {}]   ;;  %s2226_s3 = inlined_call_operand.vmem [shape: f32[32,1], index: 3, kind: input, shape index: {}]   ;;  %s2227_s4 = inlined_call_operand.vmem [shape: f32[16,32], index: 4, kind: input, shape index: {}]   ;;  %s2228_s5 = inlined_call_operand.vmem [shape: f32[16,1], index: 5, kind: input, shape index: {}]   ;;  %s2229_s6 = inlined_call_operand.vmem [shape: f32[16,1], index: 6, kind: input, shape index: {}]   ;;  %s2230_s7 = inlined_call_operand.<no memory space> [shape: f32[1,1], index: 7, kind: input, shape index: {}]   ;;  %s2231_s8 = inlined_call_operand.vmem [shape: f32[4,8], index: 8, kind: input, shape index: {}]   ;;  %s2232_s9 = inlined_call_operand.<no memory space> [shape: f32[], index: 9, kind: input, shape index: {}]   ;;  %s2233_s10 = inlined_call_operand.vmem [shape: f32[1,256], index: 10, kind: output, shape index: {}]  }
   0x1   :  { %v1613_v0 = vstv %s2232_s9  ;;  %v16_v1 = vstv %s2230_s7 }
   0x2   :  { %2235 = vst [vmem:[#allocation9_spill] sm:$0xff] %v1613_v0  ;;  %17 = vst [vmem:[#allocation7] sm:$0x1] %v16_v1 }
   0x3 LB: > { %s1624_s18 = sadd.s32 4294967295, %s1521_s17   ;;  %p1373_p0 = scmp.ge.s32.totalorder %s1521_s17, 1  ;;  %s1521_s17 = sphi %s1618_s17, %s23_s17  }
   0x4   : > { %p298_p1 = scmp.lt.s32.totalorder %s1521_s17, 3 }
   0x6   : > { %p299_p2 = pnand %p1373_p0, %p298_p1 }
   0x8   : > { %302 = sbr.rel (%p299_p2) target bundleno = 538 (0x21a), region = 56 }
   0x9   : > { %v2236_v0 = vld [vmem:[#allocation9_spill] sm:$0xff] }
   0xd   : > { %v1631_v2 = vld [vmem:[%s2223_s0 + $0x10] sm:$0xff]  ;;  %v1636_v3 = vld [vmem:[%s2223_s0] sm:$0xff]  ;;  %v360_v4 = vlaneseq  ;;  %v1523_v5 = vmov 0   ;;  %p339_p3 = scmp.lt.s32.totalorder %s1624_s18, 0  ;;  %s350_s21 = ssub.s32 0, %s1624_s18  ;;  %v1654_v8 = vld [vmem:[%s2223_s0 + $0x18] sm:$0xff] }
   0xe   : > { %1441 = vset.pattern.permute.xlu1 %v1523_v5  ;;  %1440 = vset.pattern.permute.xlu0 %v1523_v5  ;;  %p1644_p4 = scmp.lt.s32.totalorder %s350_s21, 0  ;;  %v357_v6 = vstv %s350_s21  ;;  %s1375_s23 = sshll.u32 %s1624_s18, 7  ;;  %v1659_v9 = vld [vmem:[%s2223_s0 + $0x8] sm:$0xff]  ;;  %v380_v14 = vld [vmem:[%s2223_s0 + $0x20] sm:$0xff]  ;;  %v383_v19 = vld [vmem:[%s2223_s0 + $0x38] sm:$0xff]  ;;  %v1524_v29 = vmov 1  }
   0xf   : > { %420 = vperm.xlu1 %1441, %v1631_v2   ;;  %410 = vperm.xlu0 %1440, %v1636_v3   ;;  %v1648_v7 = vshrl.u32 %v360_v4, 7  ;;  %s340_s28 = scalar_select %p339_p3, %s1624_s18, 0  ;;  %v367_v10 = vand.u32 127, %v360_v4  ;;  %v368_v11 = vstv %s1375_s23  ;;  %vm358_vm0 = vcmp.lt.s32.totalorder %v357_v6, 0  ;;  %v1669_v13 = vld [vmem:[%s2223_s0 + $0x28] sm:$0xff]  ;;  %v382_v20 = vld [vmem:[%s2223_s0 + $0x30] sm:$0xff] }
  0x10   : > { %s352_s29 = scalar_select %p1644_p4, 0, 255  ;;  %v385_v21 = vld [vmem:[%s2224_s1 + $0x8] sm:$0xff]  ;;  %v384_v22 = vld [vmem:[%s2224_s1] sm:$0xff]  ;;  %v387_v23 = vld [vmem:[%s2224_s1 + $0x18] sm:$0xff]  ;;  %v1525_v30 = vmov 2  }
  0x11   : > { %s1374_s30 = sshll.u32 %s340_s28, 2  ;;  %v369_v12 = vadd.s32 %v368_v11, %v367_v10  ;;  %vm363_vm1 = vcmp.lt.s32.totalorder %v1648_v7, 4  ;;  %v386_v24 = vld [vmem:[%s2224_s1 + $0x10] sm:$0xff]  ;;  %v389_v25 = vld [vmem:[%s2224_s1 + $0x28] sm:$0xff]  ;;  %v388_v26 = vld [vmem:[%s2224_s1 + $0x20] sm:$0xff]  ;;  %v1526_v31 = vmov 3  }
  0x12   : > { %s342_s15 = scalar_lea.vmem %s2231_s8, %s1374_s30  ;;  %s353_s16 = sand.u32 15, %s352_s29  ;;  %v391_v27 = vld [vmem:[%s2224_s1 + $0x38] sm:$0xff]  ;;  %v390_v28 = vld [vmem:[%s2224_s1 + $0x30] sm:$0xff]  ;;  %v397_v32 = vld [vmem:[%s2226_s3 + $0x8] sm:$0xff]  ;;  %v1527_v36 = vmov 4   ;;  %v1528_v37 = vmov 5  }
  0x13   : > { %425 = vperm.xlu1 %1441, %v1654_v8   ;;  %415 = vperm.xlu0 %1440, %v1659_v9   ;;  %v355_v15 = vld [vmem:[%s342_s15] sm:%s353_s16]  ;;  %vm370_vm2 = vcmp.lt.s32.totalorder %v369_v12, 8  ;;  %v1756_v35 = vld [vmem:[%s2227_s4 + $0x8] sm:$0xff]  ;;  %vm706_vm3 = vcmask 523264   ;;  %v398_v40 = vld [vmem:[%s2226_s3 + $0x10] sm:$0xff]  ;;  %v1529_v41 = vmov 7  }
  0x14   : > { %v359_v16 = vsel %vm358_vm0, %v2236_v0, %v355_v15  ;;  %v1740_v33 = vld [vmem:[%s2227_s4] sm:$0xff]  ;;  %v399_v42 = vld [vmem:[%s2226_s3 + $0x18] sm:$0xff]  ;;  %v1530_v43 = vmov 8   ;;  %v1531_v44 = vmov 10   ;;  %v403_v45 = vld [vmem:[%s2228_s5 + $0x8] sm:$0xff]  ;;  %v1532_v46 = vmov 11  }
  0x15   : > { %v364_v17 = vsel %vm363_vm1, %v359_v16, %v2236_v0  ;;  %v402_v34 = vld [vmem:[%s2228_s5] sm:$0xff]  ;;  %v1533_v49 = vmov 13   ;;  %v1806_v52 = vsub.s32 0, %v1648_v7  ;;  %v1534_v53 = vmov 14   ;;  %p347_p5 = scmp.lt.s32.totalorder %s1624_s18, 1 }
  0x16   : > { %v371_v18 = vsel %vm370_vm2, %v364_v17, %v2236_v0  ;;  %v396_v38 = vld [vmem:[%s2226_s3] sm:$0xff]  ;;  %v1535_v60 = vmov 16   ;;  %v1537_v6 = vmov 19   ;;  %v1538_v10 = vmov 20  }
  0x17   : > { %435 = vperm.xlu1 %1441, %v1669_v13   ;;  %430 = vperm.xlu0 %1440, %v380_v14   ;;  %374 = vst [vmem:[#allocation8] sm:$0xf] %v371_v18  ;;  %v1513_v39 = vld [vmem:[%s2225_s2] sm:$0xff]   ;;  %s2259_s18 = smov (!%p347_p5, %s1624_s18), 1 }
  0x18   : > { %1396 = vmatprep.mubr.msk.bf16.mxu0 %vm706_vm3, %v1513_v39  ;;  %s349_s25 = scalar_lea.vmem %s2233_s10, %s2259_s18 }
  0x1b   : > { %445 = vperm.xlu1 %1441, %v383_v19   ;;  %440 = vperm.xlu0 %1440, %v382_v20  }
  0x1e   : > { %v1810_v54 = vld [vmem:[#allocation8] sm:$0xf] }
  0x1f   : > { %467 = vperm.xlu1 %1441, %v385_v21   ;;  %462 = vperm.xlu0 %1440, %v384_v22   ;;  %v1819_v57 = vrot.slane %v1810_v54, %v1806_v52  ;;  %v1542_v22 = vmov 25  }
  0x23   : > { %477 = vperm.xlu1 %1441, %v387_v23   ;;  %472 = vperm.xlu0 %1440, %v386_v24  }
  0x27   : > { %487 = vperm.xlu1 %1441, %v389_v25   ;;  %482 = vperm.xlu0 %1440, %v388_v26   ;;  %v1874_v25 = vsub.s32 1, %v1648_v7  ;;  %v1543_v26 = vmov 26  }
  0x2b   : > { %497 = vperm.xlu1 %1441, %v391_v27   ;;  %492 = vperm.xlu0 %1440, %v390_v28   ;;  %v1879_v27 = vsub.s32 2, %v1648_v7  ;;  %v1882_v28 = vsub.s32 3, %v1648_v7 }
  0x2d   : > { %v1898_v39 = vrot.slane %v1810_v54, %v1882_v28 }
  0x2f   : > { %1443 = vset.pattern.permute.xlu1 %v1524_v29  ;;  %1442 = vset.pattern.permute.xlu0 %v1524_v29 }
  0x30   : > { %513 = vperm.xlu1 %1443, %v1659_v9   ;;  %509 = vperm.xlu0 %1442, %v1636_v3  }
  0x34   : > { %517 = vperm.xlu1 %1443, %v1631_v2   ;;  %533 = vperm.xlu0 %1442, %v382_v20  }
  0x38   : > { %537 = vperm.xlu1 %1443, %v383_v19   ;;  %529 = vperm.xlu0 %1442, %v1669_v13  }
  0x3c   : > { %1444 = vset.pattern.permute.xlu1 %v1525_v30  ;;  %1449 = vset.pattern.permute.xlu0 %v1526_v31 }
  0x3d   : > { %589 = vperm.xlu1 %1444, %v383_v19   ;;  %629 = vperm.xlu0 %1449, %v380_v14  }
  0x41   : > { %1445 = vset.pattern.permute.xlu1 %v1524_v29  ;;  %1450 = vset.pattern.permute.xlu0 %v1525_v30 }
  0x42   : > { %525 = vperm.xlu1 %1445, %v380_v14   ;;  %585 = vperm.xlu0 %1450, %v382_v20  }
  0x46   : > { %1446 = vset.pattern.permute.xlu1 %v1526_v31  ;;  %577 = vperm.xlu0 %1450, %v380_v14   ;;  %v1540_v14 = vmov 22  }
  0x47   : > { %637 = vperm.xlu1 %1446, %v382_v20  }
  0x4a   : > { %573 = vperm.xlu0 %1450, %v1654_v8  }
  0x4b   : > { %641 = vperm.xlu1 %1446, %v383_v19   ;;  %v1541_v19 = vmov 23  }
  0x4e   : > { %561 = vperm.xlu0 %1450, %v1636_v3  }
  0x4f   : > { %1447 = vset.pattern.permute.xlu1 %v1525_v30 }
  0x50   : > { %581 = vperm.xlu1 %1447, %v1669_v13  }
  0x52   : > { %1455 = vset.pattern.permute.xlu0 %v1526_v31 }
  0x53   : > { %613 = vperm.xlu0 %1455, %v1636_v3  }
  0x54   : > { %1448 = vset.pattern.permute.xlu1 %v1524_v29 }
  0x55   : > { %521 = vperm.xlu1 %1448, %v1654_v8  }
  0x57   : > { %1458 = vset.pattern.permute.xlu0 %v1523_v5 }
  0x58   : > { %683 = vperm.xlu0 %1458, %v397_v32  }
  0x59   : > { %1451 = vset.pattern.permute.xlu1 %v1526_v31 }
  0x5a   : > { %633 = vperm.xlu1 %1451, %v1669_v13   ;;  %v1539_v13 = vmov 6  }
  0x5c   : > { %768 = vperm.xlu0 %1458, %v1740_v33  }
  0x5e   : > { %1452 = vset.pattern.permute.xlu1 %v1525_v30 }
  0x5f   : > { %569 = vperm.xlu1 %1452, %v1631_v2  }
  0x60   : > { %784 = vperm.xlu0 %1458, %v402_v34  }
  0x63   : > { %1453 = vset.pattern.permute.xlu1 %v1526_v31 }
  0x64   : > { %621 = vperm.xlu1 %1453, %v1631_v2   ;;  %1459 = vset.pattern.permute.xlu0 %v1524_v29  ;;  %v1536_v2 = vmov 17  }
  0x65   : > { %795 = vperm.xlu0 %1459, %v1740_v33  }
  0x68   : > { %625 = vperm.xlu1 %1453, %v1654_v8  }
  0x69   : > { %1462 = vset.pattern.permute.xlu0 %v1525_v30 }
  0x6a   : > { %815 = vperm.xlu0 %1462, %v1756_v35  }
  0x6c   : > { %1454 = vset.pattern.permute.xlu1 %v1525_v30 }
  0x6d   : > { %565 = vperm.xlu1 %1454, %v1659_v9  }
  0x6e   : > { %1464 = vset.pattern.permute.xlu0 %v1527_v36 }
  0x6f   : > { %843 = vperm.xlu0 %1464, %v1740_v33  }
  0x71   : > { %1456 = vset.pattern.permute.xlu1 %v1526_v31 }
  0x72   : > { %617 = vperm.xlu1 %1456, %v1659_v9  }
  0x73   : > { %1467 = vset.pattern.permute.xlu0 %v1528_v37 }
  0x74   : > { %863 = vperm.xlu0 %1467, %v1756_v35  }
  0x76   : > { %1457 = vset.pattern.permute.xlu1 %v1523_v5 }
  0x77   : > { %678 = vperm.xlu1 %1457, %v396_v38   ;;  %v1894_v38 = vrot.slane %v1810_v54, %v1879_v27 }
  0x78   : > { %1469 = vset.pattern.permute.xlu0 %v1529_v41 }
  0x79   : > { %891 = vperm.xlu0 %1469, %v1740_v33  }
  0x7b   : > { %688 = vperm.xlu1 %1457, %v398_v40  }
  0x7d   : > { %1472 = vset.pattern.permute.xlu0 %v1530_v43 }
  0x7e   : > { %911 = vperm.xlu0 %1472, %v1756_v35  }
  0x7f   : > { %693 = vperm.xlu1 %1457, %v399_v42  }
  0x82   : > { %1474 = vset.pattern.permute.xlu0 %v1531_v44 }
  0x83   : > { %773 = vperm.xlu1 %1457, %v1756_v35   ;;  %939 = vperm.xlu0 %1474, %v1740_v33  }
  0x87   : > { %789 = vperm.xlu1 %1457, %v403_v45   ;;  %1477 = vset.pattern.permute.xlu0 %v1532_v46 }
  0x88   : > { %959 = vperm.xlu0 %1477, %v1756_v35  }
  0x8a   : > { %v1794_v47 = vpop.permute.xlu1 %420  ;;  %v411_v48 = vpop.permute.xlu0 %410 }
  0x8b   : > { %1460 = vset.pattern.permute.xlu1 %v1524_v29  ;;  %v452_v61 = vmul.f32 %v1819_v57, %v411_v48  ;;  %v1544_v29 = vmov 9  }
  0x8c   : > { %799 = vperm.xlu1 %1460, %v1756_v35   ;;  %1479 = vset.pattern.permute.xlu0 %v1533_v49 }
  0x8d   : > { %987 = vperm.xlu0 %1479, %v1740_v33  }
  0x8e   : > { %v1800_v50 = vpop.permute.xlu1 %425  ;;  %v1802_v51 = vpop.permute.xlu0 %415 }
  0x90   : > { %1461 = vset.pattern.permute.xlu1 %v1525_v30 }
  0x91   : > { %811 = vperm.xlu1 %1461, %v1740_v33   ;;  %1482 = vset.pattern.permute.xlu0 %v1534_v53 }
  0x92   : > { %v1812_v55 = vpop.permute.xlu1 %435  ;;  %v1814_v56 = vpop.permute.xlu0 %430  ;;  %1007 = vperm.xlu0 %1482, %v1756_v35  }
  0x95   : > { %1463 = vset.pattern.permute.xlu1 %v1526_v31  ;;  %v1888_v31 = vrot.slane %v1810_v54, %v1874_v25 }
  0x96   : > { %v1822_v58 = vpop.permute.xlu1 %445  ;;  %827 = vperm.xlu1 %1463, %v1740_v33   ;;  %v441_v59 = vpop.permute.xlu0 %440  ;;  %1484 = vset.pattern.permute.xlu0 %v1535_v60 }
  0x97   : > { %1035 = vperm.xlu0 %1484, %v1740_v33   ;;  %v458_v30 = vmul.f32 %v1819_v57, %v441_v59  ;;  %v459_v40 = vmul.f32 %v1819_v57, %v1822_v58 }
  0x9a   : > { %v1828_v62 = vpop.permute.xlu1 %467  ;;  %831 = vperm.xlu1 %1463, %v1756_v35   ;;  %v463_v63 = vpop.permute.xlu0 %462 }
  0x9b   : > { %v1831_v1 = vadd.f32 %v463_v63, %v452_v61  ;;  %1487 = vset.pattern.permute.xlu0 %v1536_v2  ;;  %v1546_v63 = vmov 29  }
  0x9c   : > { %1055 = vperm.xlu0 %1487, %v1756_v35  }
  0x9e   : > { %v1835_v3 = vpop.permute.xlu1 %477  ;;  %1465 = vset.pattern.permute.xlu1 %v1527_v36  ;;  %v1838_v4 = vpop.permute.xlu0 %472  ;;  %v1545_v36 = vmov 28  }
  0x9f   : > { %847 = vperm.xlu1 %1465, %v1756_v35  }
  0xa0   : > { %1489 = vset.pattern.permute.xlu0 %v1537_v6 }
  0xa1   : > { %1083 = vperm.xlu0 %1489, %v1740_v33  }
  0xa2   : > { %v1843_v8 = vpop.permute.xlu1 %487  ;;  %v1845_v9 = vpop.permute.xlu0 %482 }
  0xa3   : > { %1466 = vset.pattern.permute.xlu1 %v1528_v37 }
  0xa4   : > { %859 = vperm.xlu1 %1466, %v1740_v33  }
  0xa5   : > { %1492 = vset.pattern.permute.xlu0 %v1538_v10 }
  0xa6   : > { %v498_v11 = vpop.permute.xlu1 %497  ;;  %v493_v12 = vpop.permute.xlu0 %492  ;;  %1103 = vperm.xlu0 %1492, %v1756_v35  }
  0xa7   : > { %v507_v48 = vadd.f32 %v498_v11, %v459_v40 }
  0xa8   : > { %1468 = vset.pattern.permute.xlu1 %v1539_v13 }
  0xa9   : > { %875 = vperm.xlu1 %1468, %v1740_v33  }
  0xaa   : > { %1494 = vset.pattern.permute.xlu0 %v1540_v14 }
  0xab   : > { %v1853_v15 = vpop.permute.xlu1 %513  ;;  %v1855_v16 = vpop.permute.xlu0 %509  ;;  %1131 = vperm.xlu0 %1494, %v1740_v33  }
  0xad   : > { %879 = vperm.xlu1 %1468, %v1756_v35  }
  0xaf   : > { %v1859_v17 = vpop.permute.xlu1 %517  ;;  %v534_v18 = vpop.permute.xlu0 %533  ;;  %1497 = vset.pattern.permute.xlu0 %v1541_v19 }
  0xb0   : > { %1151 = vperm.xlu0 %1497, %v1756_v35   ;;  %v550_v37 = vmul.f32 %v1888_v31, %v534_v18 }
  0xb1   : > { %1470 = vset.pattern.permute.xlu1 %v1529_v41  ;;  %v506_v41 = vadd.f32 %v493_v12, %v458_v30 }
  0xb2   : > { %895 = vperm.xlu1 %1470, %v1756_v35  }
  0xb3   : > { %v538_v20 = vpop.permute.xlu1 %537  ;;  %v1865_v21 = vpop.permute.xlu0 %529  ;;  %v558_v59 = vadd.f32 %v550_v37, %v506_v41 }
  0xb4   : > { %1499 = vset.pattern.permute.xlu0 %v1542_v22  ;;  %v551_v42 = vmul.f32 %v1888_v31, %v538_v20 }
  0xb5   : > { %1179 = vperm.xlu0 %1499, %v1740_v33  }
  0xb6   : > { %1471 = vset.pattern.permute.xlu1 %v1530_v43  ;;  %v559_v58 = vadd.f32 %v551_v42, %v507_v48  ;;  %v549_v48 = vmul.f32 %v1888_v31, %v1865_v21 }
  0xb7   : > { %907 = vperm.xlu1 %1471, %v1740_v33  }
  0xb8   : > { %v590_v23 = vpop.permute.xlu1 %589  ;;  %v1871_v24 = vpop.permute.xlu0 %629 }
  0xb9   : > { %1502 = vset.pattern.permute.xlu0 %v1543_v26  ;;  %v603_v61 = vmul.f32 %v1894_v38, %v590_v23 }
  0xba   : > { %1199 = vperm.xlu0 %1502, %v1756_v35  }
  0xbb   : > { %1473 = vset.pattern.permute.xlu1 %v1544_v29  ;;  %v611_v18 = vadd.f32 %v603_v61, %v559_v58  ;;  %v1547_v29 = vmov 31  }
  0xbc   : > { %923 = vperm.xlu1 %1473, %v1740_v33  }
  0xbd   : > { %v526_v32 = vpop.permute.xlu1 %525  ;;  %v586_v34 = vpop.permute.xlu0 %585 }
  0xbe   : > { %1504 = vset.pattern.permute.xlu0 %v1545_v36  ;;  %v602_v43 = vmul.f32 %v1894_v38, %v586_v34  ;;  %v548_v41 = vmul.f32 %v1888_v31, %v526_v32 }
  0xbf   : > { %1227 = vperm.xlu0 %1504, %v1740_v33  }
  0xc0   : > { %927 = vperm.xlu1 %1473, %v1756_v35   ;;  %v610_v12 = vadd.f32 %v602_v43, %v558_v59 }
  0xc1   : > { %v578_v30 = vpop.permute.xlu0 %577 }
  0xc2   : > { %v638_v45 = vpop.permute.xlu1 %637 }
  0xc3   : > { %v654_v54 = vmul.f32 %v1898_v39, %v638_v45  ;;  %1507 = vset.pattern.permute.xlu0 %v1546_v63  ;;  %v1548_v45 = vmov 12  }
  0xc4   : > { %1475 = vset.pattern.permute.xlu1 %v1531_v44  ;;  %1247 = vperm.xlu0 %1507, %v1756_v35   ;;  %v456_v44 = vmul.f32 %v1819_v57, %v1814_v56  ;;  %v457_v56 = vmul.f32 %v1819_v57, %v1812_v55 }
  0xc5   : > { %943 = vperm.xlu1 %1475, %v1756_v35   ;;  %v662_v20 = vadd.f32 %v654_v54, %v610_v12 }
  0xc6   : > { %v642_v13 = vpop.permute.xlu1 %641  ;;  %v504_v43 = vadd.f32 %v1845_v9, %v456_v44  ;;  %v505_v61 = vadd.f32 %v1843_v8, %v457_v56  ;;  %v652_v9 = vmul.f32 %v1898_v39, %v1871_v24  ;;  %v454_v24 = vmul.f32 %v1819_v57, %v1794_v47  ;;  %v574_v44 = vpop.permute.xlu0 %573 }
  0xc7   : > { %v655_v11 = vmul.f32 %v1898_v39, %v642_v13  ;;  %v670_v37 = vmax.f32 %v662_v20, 0.0 }
  0xc8   : > { %1509 = vset.pattern.permute.xlu0 %v1547_v29  ;;  %v556_v59 = vadd.f32 %v548_v41, %v504_v43  ;;  %v557_v12 = vadd.f32 %v549_v48, %v505_v61  ;;  %v502_v41 = vadd.f32 %v1838_v4, %v454_v24  ;;  %v599_v43 = vmul.f32 %v1894_v38, %v574_v44 }
  0xc9   : > { %v663_v23 = vadd.f32 %v655_v11, %v611_v18  ;;  %1476 = vset.pattern.permute.xlu1 %v1532_v46  ;;  %1275 = vperm.xlu0 %1509, %v1740_v33   ;;  %v600_v46 = vmul.f32 %v1894_v38, %v578_v30  ;;  %v455_v30 = vmul.f32 %v1819_v57, %v1800_v50  ;;  %v1550_v44 = vmov 18  }
  0xca   : > { %955 = vperm.xlu1 %1476, %v1740_v33   ;;  %v544_v61 = vmul.f32 %v1888_v31, %v1855_v16 }
  0xcb   : > { %v582_v34 = vpop.permute.xlu1 %581  ;;  %v671_v40 = vmax.f32 %v663_v23, 0.0  ;;  %v608_v54 = vadd.f32 %v600_v46, %v556_v59 }
  0xcc   : > { %v601_v58 = vmul.f32 %v1894_v38, %v582_v34  ;;  %v546_v34 = vmul.f32 %v1888_v31, %v1859_v17 }
  0xcd   : > { %v675_v42 = vpack.c.bf16 %v671_v40, %v670_v37  ;;  %1512 = vset.pattern.permute.xlu0 %v1523_v5  ;;  %v660_v18 = vadd.f32 %v652_v9, %v608_v54  ;;  %v503_v40 = vadd.f32 %v1835_v3, %v455_v30 }
  0xce   : > { %1478 = vset.pattern.permute.xlu1 %v1548_v45  ;;  %v609_v55 = vadd.f32 %v601_v58, %v557_v12  ;;  %v554_v50 = vadd.f32 %v546_v34, %v502_v41  ;;  %v562_v45 = vpop.permute.xlu0 %561  ;;  %v545_v58 = vmul.f32 %v1888_v31, %v1853_v15  ;;  %v1514_v34 = vld [vmem:[%s2225_s2 + $0x8] sm:$0xff]  }
  0xcf   : > { %971 = vperm.xlu1 %1478, %v1740_v33   ;;  %1388 = vmatprep.subr.bf16.mxu0 %v675_v42  ;;  %v668_v8 = vmax.f32 %v660_v18, 0.0  ;;  %v596_v12 = vmul.f32 %v1894_v38, %v562_v45 }
  0xd0   : > { %v522_v32 = vpop.permute.xlu1 %521  ;;  %1389 = vmatpush3.bf16.msra.mxu0 %v675_v42 }
  0xd1   : > { %v547_v37 = vmul.f32 %v1888_v31, %v522_v32  ;;  %v453_v32 = vmul.f32 %v1819_v57, %v1802_v51 }
  0xd2   : > { %v614_v54 = vpop.permute.xlu0 %613 }
  0xd3   : > { %975 = vperm.xlu1 %1478, %v1756_v35   ;;  %v555_v17 = vadd.f32 %v547_v37, %v503_v40  ;;  %v648_v51 = vmul.f32 %v1898_v39, %v614_v54  ;;  %v405_v37 = vld [vmem:[%s2229_s6 + $0x8] sm:$0xff]  ;;  %v1551_v40 = vmov 21  }
  0xd4   : > { %1299 = vperm.xlu0 %1512, %v405_v37  }
  0xd5   : > { %v634_v13 = vpop.permute.xlu1 %633  ;;  %v607_v4 = vadd.f32 %v599_v43, %v555_v17  ;;  %v1553_v43 = vmov 27  }
  0xd6   : > { %v653_v20 = vmul.f32 %v1898_v39, %v634_v13 }
  0xd7   : > { %1480 = vset.pattern.permute.xlu1 %v1533_v49 }
  0xd8   : > { %v661_v21 = vadd.f32 %v653_v20, %v609_v55  ;;  %991 = vperm.xlu1 %1480, %v1756_v35   ;;  %v501_v20 = vadd.f32 %v1828_v62, %v453_v32 }
  0xda   : > { %v669_v11 = vmax.f32 %v661_v21, 0.0  ;;  %v570_v23 = vpop.permute.xlu1 %569  ;;  %v552_v21 = vadd.f32 %v544_v61, %v1831_v1 }
  0xdb   : > { %v598_v47 = vmul.f32 %v1894_v38, %v570_v23 }
  0xdc   : > { %1481 = vset.pattern.permute.xlu1 %v1534_v53  ;;  %v674_v49 = vpack.c.bf16 %v669_v11, %v668_v8  ;;  %v1549_v53 = vmov 15   ;;  %v553_v8 = vadd.f32 %v545_v58, %v501_v20  ;;  %v604_v15 = vadd.f32 %v596_v12, %v552_v21 }
  0xdd   : > { %1003 = vperm.xlu1 %1481, %v1740_v33   ;;  %v606_v56 = vadd.f32 %v598_v47, %v554_v50 }
  0xde   : > { %1390 = vmatprep.subr.bf16.mxu0 %v674_v49  ;;  %v656_v11 = vadd.f32 %v648_v51, %v604_v15 }
  0xdf   : > { %v622_v42 = vpop.permute.xlu1 %621  ;;  %1391 = vmatpush3.bf16.msra.mxu0 %v674_v49 }
  0xe0   : > { %v650_v46 = vmul.f32 %v1898_v39, %v622_v42 }
  0xe1   : > { %1483 = vset.pattern.permute.xlu1 %v1549_v53 }
  0xe2   : > { %1019 = vperm.xlu1 %1483, %v1740_v33   ;;  %v658_v48 = vadd.f32 %v650_v46, %v606_v56  ;;  %v1554_v46 = vmov 30  }
  0xe3   : > { %v626_v3 = vpop.permute.xlu1 %625 }
  0xe4   : > { %v651_v59 = vmul.f32 %v1898_v39, %v626_v3  ;;  %v666_v13 = vmax.f32 %v658_v48, 0.0 }
  0xe6   : > { %v659_v9 = vadd.f32 %v651_v59, %v607_v4  ;;  %1023 = vperm.xlu1 %1483, %v1756_v35   ;;  %v684_v4 = vpop.permute.xlu0 %683 }
  0xe8   : > { %v667_v18 = vmax.f32 %v659_v9, 0.0  ;;  %v566_v55 = vpop.permute.xlu1 %565 }
  0xe9   : > { %v597_v57 = vmul.f32 %v1894_v38, %v566_v55  ;;  %v664_v38 = vmax.f32 %v656_v11, 0.0 }
  0xea   : > { %1485 = vset.pattern.permute.xlu1 %v1535_v60  ;;  %v673_v16 = vpack.c.bf16 %v667_v18, %v666_v13  ;;  %v769_v32 = vpop.permute.xlu0 %768 }
  0xeb   : > { %1039 = vperm.xlu1 %1485, %v1756_v35   ;;  %v605_v23 = vadd.f32 %v597_v57, %v553_v8 }
  0xec   : > { %1392 = vmatprep.subr.bf16.mxu0 %v673_v16 }
  0xed   : > { %v618_v31 = vpop.permute.xlu1 %617  ;;  %1393 = vmatpush3.bf16.msra.mxu0 %v673_v16 }
  0xee   : > { %v649_v62 = vmul.f32 %v1898_v39, %v618_v31  ;;  %v785_v61 = vpop.permute.xlu0 %784 }
  0xef   : > { %1486 = vset.pattern.permute.xlu1 %v1536_v2 }
  0xf0   : > { %v657_v1 = vadd.f32 %v649_v62, %v605_v23  ;;  %1051 = vperm.xlu1 %1486, %v1740_v33  }
  0xf2   : > { %v665_v24 = vmax.f32 %v657_v1, 0.0  ;;  %v1969_v60 = vpop.permute.xlu1 %678  ;;  %v796_v54 = vpop.permute.xlu0 %795 }
  0xf4   : > { %1488 = vset.pattern.permute.xlu1 %v1550_v44  ;;  %v672_v30 = vpack.c.bf16 %v665_v24, %v664_v38 }
  0xf5   : > { %1067 = vperm.xlu1 %1488, %v1740_v33  }
  0xf6   : > { %1394 = vmatprep.subr.bf16.mxu0 %v672_v30  ;;  %v1975_v39 = vpop.permute.xlu1 %688  ;;  %v816_v12 = vpop.permute.xlu0 %815 }
  0xf7   : > { %1395 = vmatpush3.bf16.msra.mxu0 %v672_v30 }
  0xf9   : > { %1071 = vperm.xlu1 %1488, %v1756_v35  }
  0xfa   : > { %1397 = vmatmul.mubr.msk.bf16.vlgmr.msra.gmra.mxu0 %vm706_vm3, %v1514_v34  ;;  %v1979_v2 = vpop.permute.xlu1 %693  ;;  %v844_v18 = vpop.permute.xlu0 %843 }
  0xfd   : > { %1490 = vset.pattern.permute.xlu1 %v1537_v6 }
  0xfe   : > { %1087 = vperm.xlu1 %1490, %v1756_v35   ;;  %v1987_v49 = vpop.permute.xlu1 %773  ;;  %v864_v20 = vpop.permute.xlu0 %863 }
 0x102   : > { %1491 = vset.pattern.permute.xlu1 %v1538_v10  ;;  %v1991_v41 = vpop.permute.xlu1 %789  ;;  %v1552_v10 = vmov 24   ;;  %v2066_v51 = vpop.permute.xlu0 %891 }
 0x103   : > { %1099 = vperm.xlu1 %1491, %v1740_v33  }
 0x106   : > { %v2070_v16 = vpop.permute.xlu0 %911 }
 0x107   : > { %1493 = vset.pattern.permute.xlu1 %v1551_v40  ;;  %v1994_v6 = vpop.permute.xlu1 %799 }
 0x108   : > { %1115 = vperm.xlu1 %1493, %v1740_v33  }
 0x10a   : > { %v2074_v15 = vpop.permute.xlu0 %939 }
 0x10c   : > { %1119 = vperm.xlu1 %1493, %v1756_v35   ;;  %v1998_v47 = vpop.permute.xlu1 %811 }
 0x10e   : > { %v2078_v11 = vpop.permute.xlu0 %959 }
 0x110   : > { %1495 = vset.pattern.permute.xlu1 %v1540_v14 }
 0x111   : > { %1135 = vperm.xlu1 %1495, %v1756_v35   ;;  %v2002_v42 = vpop.permute.xlu1 %827 }
 0x112   : > { %v2082_v62 = vpop.permute.xlu0 %987 }
 0x115   : > { %1496 = vset.pattern.permute.xlu1 %v1541_v19  ;;  %v2006_v50 = vpop.permute.xlu1 %831 }
 0x116   : > { %1147 = vperm.xlu1 %1496, %v1740_v33   ;;  %v2088_v24 = vpop.permute.xlu0 %1007 }
 0x11a   : > { %1498 = vset.pattern.permute.xlu1 %v1552_v10  ;;  %v2010_v14 = vpop.permute.xlu1 %847 }
 0x11b   : > { %1163 = vperm.xlu1 %1498, %v1740_v33  }
 0x11f   : > { %1167 = vperm.xlu1 %1498, %v1756_v35   ;;  %v2014_v19 = vpop.permute.xlu1 %859 }
 0x123   : > { %1500 = vset.pattern.permute.xlu1 %v1542_v22 }
 0x124   : > { %1183 = vperm.xlu1 %1500, %v1756_v35   ;;  %v2018_v17 = vpop.permute.xlu1 %875 }
 0x128   : > { %1501 = vset.pattern.permute.xlu1 %v1543_v26  ;;  %v2022_v22 = vpop.permute.xlu1 %879 }
 0x129   : > { %1195 = vperm.xlu1 %1501, %v1740_v33  }
 0x12d   : > { %1503 = vset.pattern.permute.xlu1 %v1553_v43  ;;  %v2026_v26 = vpop.permute.xlu1 %895 }
 0x12e   : > { %1211 = vperm.xlu1 %1503, %v1740_v33  }
 0x132   : > { %1215 = vperm.xlu1 %1503, %v1756_v35   ;;  %v2029_v45 = vpop.permute.xlu1 %907 }
 0x136   : > { %1505 = vset.pattern.permute.xlu1 %v1545_v36 }
 0x137   : > { %1231 = vperm.xlu1 %1505, %v1756_v35   ;;  %v2034_v36 = vpop.permute.xlu1 %923 }
 0x13b   : > { %1506 = vset.pattern.permute.xlu1 %v1546_v63  ;;  %v404_v63 = vld [vmem:[%s2229_s6] sm:$0xff]  ;;  %v2040_v53 = vpop.permute.xlu1 %927 }
 0x13c   : > { %1243 = vperm.xlu1 %1506, %v1740_v33  }
 0x140   : > { %1508 = vset.pattern.permute.xlu1 %v1554_v46  ;;  %v2042_v56 = vpop.permute.xlu1 %943  ;;  %v2097_v46 = vpop.permute.xlu0 %1035 }
 0x141   : > { %1259 = vperm.xlu1 %1508, %v1740_v33   ;;  %v406_v33 = vld [vmem:[#allocation7] sm:$0x1] }
 0x145   : > { %1263 = vperm.xlu1 %1508, %v1756_v35   ;;  %v2044_v3 = vpop.permute.xlu1 %955 }
 0x149   : > { %1510 = vset.pattern.permute.xlu1 %v1547_v29 }
 0x14a   : > { %1279 = vperm.xlu1 %1510, %v1756_v35   ;;  %v2046_v29 = vpop.permute.xlu1 %971 }
 0x14e   : > { %1511 = vset.pattern.permute.xlu1 %v1523_v5  ;;  %v2048_v35 = vpop.permute.xlu1 %975 }
 0x14f   : > { %1294 = vperm.xlu1 %1511, %v404_v63  }
 0x153   : > { %1313 = vperm.xlu1 %1511, %v406_v33   ;;  %v2050_v48 = vpop.permute.xlu1 %991 }
 0x158   : > { %v2052_v59 = vpop.permute.xlu1 %1003 }
 0x15d   : > { %v2054_v5 = vpop.permute.xlu1 %1019 }
 0x161   : > { %v2056_v9 = vpop.permute.xlu1 %1023 }
 0x166   : > { %v2058_v58 = vpop.permute.xlu1 %1039 }
 0x16b   : > { %v2060_v13 = vpop.permute.xlu1 %1051 }
 0x170   : > { %v2062_v55 = vpop.permute.xlu1 %1067 }
 0x171   : > { %2238 = vst [vmem:[#allocation10_spill] sm:$0xff] %v2062_v55 }
 0x174   : > { %v2064_v21 = vpop.permute.xlu1 %1071 }
 0x175   : > { %2239 = vst [vmem:[#allocation11_spill] sm:$0xff] %v2064_v21 }
 0x179   : > { %v2068_v57 = vpop.permute.xlu1 %1087 }
 0x17a   : > { %2240 = vst [vmem:[#allocation12_spill] sm:$0xff] %v2068_v57 }
 0x17e   : > { %v2072_v8 = vpop.permute.xlu1 %1099 }
 0x17f   : > { %2241 = vst [vmem:[#allocation13_spill] sm:$0xff] %v2072_v8  ;;  %v2109_v8 = vsub.s32 5, %v1648_v7 }
 0x183   : > { %v2076_v31 = vpop.permute.xlu1 %1115 }
 0x184   : > { %2242 = vst [vmem:[#allocation14_spill] sm:$0xff] %v2076_v31 }
 0x187   : > { %v2080_v23 = vpop.permute.xlu1 %1119 }
 0x188   : > { %2243 = vst [vmem:[#allocation15_spill] sm:$0xff] %v2080_v23  ;;  %v2104_v23 = vsub.s32 4, %v1648_v7 }
 0x18c   : > { %v2084_v1 = vpop.permute.xlu1 %1135 }
 0x18d   : > { %2244 = vst [vmem:[#allocation16_spill] sm:$0xff] %v2084_v1 }
 0x191   : > { %v2090_v44 = vpop.permute.xlu1 %1147 }
 0x192   : > { %2245 = vst [vmem:[#allocation17_spill] sm:$0xff] %v2090_v44 }
 0x196   : > { %v2099_v63 = vpop.permute.xlu1 %1163 }
 0x197   : > { %2247 = vst [vmem:[#allocation19_spill] sm:$0xff] %v2099_v63 }
 0x1ba   : > { %v2086_v38 = vpop.f32.mrf.mxu0 }
 0x1bc   : > { %v747_v30 = vpop.f32.mrf.mxu0 }
 0x1bd   : > { %v748_v34 = vadd.f32 %v747_v30, %v1969_v60 }
 0x1be   : > { %v2093_v40 = vpop.f32.mrf.mxu0 }
 0x1bf   : > { %v762_v37 = vmax.f32 %v748_v34, 0.0  ;;  %2246 = vst [vmem:[#allocation18_spill] sm:$0xff] %v2093_v40  ;;  %v2114_v40 = vpop.permute.xlu0 %1055 }
 0x1c0   : > { %v750_v44 = vpop.f32.mrf.mxu0 }
 0x1c1   : > { %v779_v10 = vrot.slane %v762_v37, %v1806_v52  ;;  %v805_v43 = vrot.slane %v762_v37, %v1874_v25  ;;  %v821_v33 = vrot.slane %v762_v37, %v1879_v27  ;;  %v751_v57 = vadd.f32 %v750_v44, %v684_v4 }
 0x1c2   : > { %v853_v21 = vrot.slane %v762_v37, %v2104_v23 }
 0x1c3   : > { %v780_v0 = vmul.f32 %v779_v10, %v769_v32  ;;  %v781_v1 = vmul.f32 %v779_v10, %v1987_v49  ;;  %v806_v34 = vmul.f32 %v805_v43, %v796_v54  ;;  %v807_v31 = vmul.f32 %v805_v43, %v1994_v6 }
 0x1c4   : > { %v822_v63 = vmul.f32 %v821_v33, %v1998_v47  ;;  %v837_v32 = vrot.slane %v762_v37, %v1882_v28  ;;  %v823_v10 = vmul.f32 %v821_v33, %v816_v12  ;;  %v2120_v6 = vsub.s32 6, %v1648_v7 }
 0x1c5   : > { %v792_v60 = vadd.f32 %v785_v61, %v780_v0  ;;  %v793_v30 = vadd.f32 %v1991_v41, %v781_v1  ;;  %v2116_v0 = vpop.permute.xlu1 %1167  ;;  %v869_v41 = vrot.slane %v762_v37, %v2109_v8  ;;  %v763_v1 = vmax.f32 %v751_v57, 0.0 }
 0x1c6   : > { %v838_v47 = vmul.f32 %v837_v32, %v2002_v42  ;;  %v839_v54 = vmul.f32 %v837_v32, %v2006_v50  ;;  %v885_v12 = vrot.slane %v762_v37, %v2120_v6  ;;  %v854_v33 = vmul.f32 %v853_v21, %v844_v18 }
 0x1c7   : > { %v808_v55 = vadd.f32 %v806_v34, %v792_v60  ;;  %v809_v49 = vadd.f32 %v807_v31, %v793_v30  ;;  %v2126_v31 = vsub.s32 7, %v1648_v7  ;;  %v855_v60 = vmul.f32 %v853_v21, %v2010_v14 }
 0x1c8   : > { %v917_v57 = vrot.slane %v763_v1, %v1806_v52  ;;  %v887_v18 = vmul.f32 %v885_v12, %v2022_v22  ;;  %v965_v22 = vrot.slane %v763_v1, %v1882_v28 }
 0x1c9   : > { %v824_v61 = vadd.f32 %v822_v63, %v808_v55  ;;  %v825_v4 = vadd.f32 %v823_v10, %v809_v49  ;;  %v901_v30 = vrot.slane %v762_v37, %v2126_v31  ;;  %v870_v55 = vmul.f32 %v869_v41, %v2014_v19  ;;  %v2131_v49 = vpop.permute.xlu0 %1083  ;;  %v2133_v50 = vpop.permute.xlu1 %1183 }
 0x1ca   : > { %v871_v63 = vmul.f32 %v869_v41, %v864_v20  ;;  %v886_v10 = vmul.f32 %v885_v12, %v2018_v17  ;;  %v933_v20 = vrot.slane %v763_v1, %v1874_v25  ;;  %v949_v41 = vrot.slane %v763_v1, %v1879_v27 }
 0x1cb   : > { %v840_v44 = vadd.f32 %v838_v47, %v824_v61  ;;  %v841_v43 = vadd.f32 %v839_v54, %v825_v4  ;;  %v902_v14 = vmul.f32 %v901_v30, %v2066_v51  ;;  %v903_v19 = vmul.f32 %v901_v30, %v2026_v26 }
 0x1cc   : > { %v918_v47 = vmul.f32 %v917_v57, %v2029_v45  ;;  %v919_v54 = vmul.f32 %v917_v57, %v2070_v16  ;;  %v934_v26 = vmul.f32 %v933_v20, %v2034_v36  ;;  %v950_v16 = vmul.f32 %v949_v41, %v2074_v15 }
 0x1cd   : > { %v856_v34 = vadd.f32 %v854_v33, %v840_v44  ;;  %v857_v42 = vadd.f32 %v855_v60, %v841_v43  ;;  %v2144_v44 = vpop.permute.xlu0 %1103  ;;  %v2146_v17 = vpop.permute.xlu1 %1195  ;;  %v935_v43 = vmul.f32 %v933_v20, %v2040_v53  ;;  %v756_v33 = vadd.f32 %v2086_v38, %v1975_v39 }
 0x1ce   : > { %v981_v60 = vrot.slane %v763_v1, %v2104_v23  ;;  %v966_v57 = vmul.f32 %v965_v22, %v2044_v3  ;;  %v967_v36 = vmul.f32 %v965_v22, %v2078_v11  ;;  %v1029_v11 = vrot.slane %v763_v1, %v2126_v31 }
 0x1cf   : > { %v872_v7 = vadd.f32 %v870_v55, %v856_v34  ;;  %v873_v32 = vadd.f32 %v871_v63, %v857_v42  ;;  %v951_v55 = vmul.f32 %v949_v41, %v2042_v56  ;;  %v997_v63 = vrot.slane %v763_v1, %v2109_v8 }
 0x1d0   : > { %v764_v39 = vmax.f32 %v756_v33, 0.0  ;;  %v982_v38 = vmul.f32 %v981_v60, %v2046_v29  ;;  %v983_v15 = vmul.f32 %v981_v60, %v2048_v35  ;;  %v1013_v56 = vrot.slane %v763_v1, %v2120_v6 }
 0x1d1   : > { %v888_v21 = vadd.f32 %v886_v10, %v872_v7  ;;  %v889_v37 = vadd.f32 %v887_v18, %v873_v32  ;;  %v2159_v53 = vpop.permute.xlu0 %1131  ;;  %v2161_v7 = vpop.permute.xlu1 %1211  ;;  %v998_v18 = vmul.f32 %v997_v63, %v2082_v62  ;;  %v999_v3 = vmul.f32 %v997_v63, %v2050_v48 }
 0x1d2   : > { %v1014_v29 = vmul.f32 %v1013_v56, %v2052_v59  ;;  %v1015_v41 = vmul.f32 %v1013_v56, %v2088_v24  ;;  %v1031_v48 = vmul.f32 %v1029_v11, %v2056_v9  ;;  %v1077_v1 = vrot.slane %v764_v39, %v1879_v27  ;;  %v2248_v9 = vld [vmem:[#allocation18_spill] sm:$0xff] }
 0x1d3   : > { %v904_v61 = vadd.f32 %v902_v14, %v888_v21  ;;  %v905_v4 = vadd.f32 %v903_v19, %v889_v37  ;;  %v1045_v37 = vrot.slane %v764_v39, %v1806_v52  ;;  %v1093_v24 = vrot.slane %v764_v39, %v1882_v28 }
 0x1d4   : > { %v1141_v56 = vrot.slane %v764_v39, %v2120_v6 }
 0x1d5   : > { %v920_v51 = vadd.f32 %v918_v47, %v904_v61  ;;  %v921_v12 = vadd.f32 %v919_v54, %v905_v4  ;;  %v1152_v61 = vpop.permute.xlu0 %1151  ;;  %v2172_v35 = vpop.permute.xlu1 %1215  ;;  %v1061_v4 = vrot.slane %v764_v39, %v1874_v25  ;;  %v1030_v54 = vmul.f32 %v1029_v11, %v2054_v5 }
 0x1d6   : > { %v1047_v59 = vmul.f32 %v1045_v37, %v2058_v58  ;;  %v2250_v58 = vld [vmem:[#allocation10_spill] sm:$0xff] }
 0x1d7   : > { %v936_v45 = vadd.f32 %v934_v26, %v920_v51  ;;  %v937_v30 = vadd.f32 %v935_v43, %v921_v12  ;;  %v1046_v12 = vmul.f32 %v1045_v37, %v2097_v46  ;;  %v1062_v33 = vmul.f32 %v1061_v4, %v2060_v13  ;;  %v2249_v46 = vld [vmem:[#allocation11_spill] sm:$0xff]  ;;  %v2253_v37 = vld [vmem:[#allocation14_spill] sm:$0xff] }
 0x1d8   : > { %v1063_v60 = vmul.f32 %v1061_v4, %v2114_v40  ;;  %v1094_v40 = vmul.f32 %v1093_v24, %v2131_v49  ;;  %v1157_v4 = vrot.slane %v764_v39, %v2126_v31 }
 0x1d9   : > { %v952_v34 = vadd.f32 %v950_v16, %v936_v45  ;;  %v953_v42 = vadd.f32 %v951_v55, %v937_v30  ;;  %v1180_v45 = vpop.permute.xlu0 %1179  ;;  %v1232_v5 = vpop.permute.xlu1 %1231  ;;  %v759_v30 = vadd.f32 %v2248_v9, %v1979_v2  ;;  %v1109_v16 = vrot.slane %v764_v39, %v2104_v23 }
 0x1db   : > { %v968_v32 = vadd.f32 %v966_v57, %v952_v34  ;;  %v969_v10 = vadd.f32 %v967_v36, %v953_v42  ;;  %v1079_v34 = vmul.f32 %v1077_v1, %v2249_v46  ;;  %v1078_v42 = vmul.f32 %v1077_v1, %v2250_v58 }
 0x1dc   : > { %v1125_v57 = vrot.slane %v764_v39, %v2109_v8 }
 0x1dd   : > { %v984_v14 = vadd.f32 %v982_v38, %v968_v32  ;;  %v985_v21 = vadd.f32 %v983_v15, %v969_v10  ;;  %v2251_v38 = vld [vmem:[#allocation12_spill] sm:$0xff]  ;;  %v765_v10 = vmax.f32 %v759_v30, 0.0  ;;  %v1111_v15 = vmul.f32 %v1109_v16, %v2144_v44  ;;  %v1244_v11 = vpop.permute.xlu1 %1243 }
 0x1de   : > { %v1095_v13 = vmul.f32 %v1093_v24, %v2251_v38  ;;  %v1142_v44 = vmul.f32 %v1141_v56, %v2159_v53  ;;  %v2256_v24 = vld [vmem:[#allocation17_spill] sm:$0xff] }
 0x1df   : > { %v1000_v19 = vadd.f32 %v998_v18, %v984_v14  ;;  %v1001_v20 = vadd.f32 %v999_v3, %v985_v21  ;;  %v2252_v14 = vld [vmem:[#allocation13_spill] sm:$0xff]  ;;  %v1200_v3 = vpop.permute.xlu0 %1199  ;;  %v1173_v49 = vrot.slane %v765_v10, %v1806_v52  ;;  %v1205_v39 = vrot.slane %v765_v10, %v1879_v27 }
 0x1e0   : > { %v1110_v21 = vmul.f32 %v1109_v16, %v2252_v14  ;;  %v2257_v16 = vld [vmem:[#allocation19_spill] sm:$0xff] }
 0x1e1   : > { %v1016_v62 = vadd.f32 %v1014_v29, %v1000_v19  ;;  %v1017_v47 = vadd.f32 %v1015_v41, %v1001_v20  ;;  %v1126_v19 = vmul.f32 %v1125_v57, %v2253_v37  ;;  %v2254_v20 = vld [vmem:[#allocation15_spill] sm:$0xff]  ;;  %v1175_v9 = vmul.f32 %v1173_v49, %v2116_v0 }
 0x1e2   : > { %v1127_v29 = vmul.f32 %v1125_v57, %v2254_v20  ;;  %v1174_v53 = vmul.f32 %v1173_v49, %v2257_v16  ;;  %v1206_v27 = vmul.f32 %v1205_v39, %v2146_v17  ;;  %v1253_v0 = vrot.slane %v765_v10, %v2109_v8 }
 0x1e3   : > { %v1032_v22 = vadd.f32 %v1030_v54, %v1016_v62  ;;  %v1033_v51 = vadd.f32 %v1031_v48, %v1017_v47  ;;  %v2255_v54 = vld [vmem:[#allocation16_spill] sm:$0xff] }
 0x1e4   : > { %v1143_v48 = vmul.f32 %v1141_v56, %v2255_v54 }
 0x1e5   : > { %v1048_v26 = vadd.f32 %v1046_v12, %v1032_v22  ;;  %v1049_v43 = vadd.f32 %v1047_v59, %v1033_v51  ;;  %v1189_v22 = vrot.slane %v765_v10, %v1874_v25  ;;  %v1159_v12 = vmul.f32 %v1157_v4, %v1152_v61 }
 0x1e6   : > { %v1221_v25 = vrot.slane %v765_v10, %v1882_v28  ;;  %v1269_v28 = vrot.slane %v765_v10, %v2120_v6 }
 0x1e7   : > { %v1064_v55 = vadd.f32 %v1062_v33, %v1048_v26  ;;  %v1065_v63 = vadd.f32 %v1063_v60, %v1049_v43  ;;  %v1158_v26 = vmul.f32 %v1157_v4, %v2256_v24  ;;  %v1228_v43 = vpop.permute.xlu0 %1227  ;;  %v1260_v33 = vpop.permute.xlu1 %1259  ;;  %v1190_v61 = vmul.f32 %v1189_v22, %v1180_v45 }
 0x1e9   : > { %v1081_v36 = vadd.f32 %v1079_v34, %v1065_v63  ;;  %v1080_v32 = vadd.f32 %v1078_v42, %v1064_v55  ;;  %v1191_v55 = vmul.f32 %v1189_v22, %v2133_v50  ;;  %v1207_v34 = vmul.f32 %v1205_v39, %v1200_v3 }
 0x1ea   : > { %v1237_v42 = vrot.slane %v765_v10, %v2104_v23  ;;  %v1254_v23 = vmul.f32 %v1253_v0, %v1244_v11 }
 0x1eb   : > { %v1097_v2 = vadd.f32 %v1095_v13, %v1081_v36  ;;  %v1096_v18 = vadd.f32 %v1094_v40, %v1080_v32  ;;  %v1248_v36 = vpop.permute.xlu0 %1247  ;;  %v1264_v38 = vpop.permute.xlu1 %1263  ;;  %v1223_v32 = vmul.f32 %v1221_v25, %v2172_v35  ;;  %v1222_v40 = vmul.f32 %v1221_v25, %v2161_v7 }
 0x1ec   : > { %v1238_v56 = vmul.f32 %v1237_v42, %v1228_v43  ;;  %v1271_v35 = vmul.f32 %v1269_v28, %v1264_v38 }
 0x1ed   : > { %v1113_v41 = vadd.f32 %v1111_v15, %v1097_v2  ;;  %v1112_v62 = vadd.f32 %v1110_v21, %v1096_v18  ;;  %v1239_v15 = vmul.f32 %v1237_v42, %v1232_v5  ;;  %v1255_v18 = vmul.f32 %v1253_v0, %v1248_v36 }
 0x1ee   : > { %v1285_v21 = vrot.slane %v765_v10, %v2126_v31 }
 0x1ef   : > { %v1129_v47 = vadd.f32 %v1127_v29, %v1113_v41  ;;  %v1128_v1 = vadd.f32 %v1126_v19, %v1112_v62  ;;  %v1276_v8 = vpop.permute.xlu0 %1275  ;;  %v1280_v3 = vpop.permute.xlu1 %1279  ;;  %v1270_v19 = vmul.f32 %v1269_v28, %v1260_v33 }
 0x1f0   : > { %v1286_v6 = vmul.f32 %v1285_v21, %v1276_v8  ;;  %v1287_v41 = vmul.f32 %v1285_v21, %v1280_v3 }
 0x1f1   : > { %v1145_v51 = vadd.f32 %v1143_v48, %v1129_v47  ;;  %v1144_v59 = vadd.f32 %v1142_v44, %v1128_v1 }
 0x1f3   : > { %v1161_v60 = vadd.f32 %v1159_v12, %v1145_v51  ;;  %v1160_v30 = vadd.f32 %v1158_v26, %v1144_v59  ;;  %v1300_v11 = vpop.permute.xlu0 %1299  ;;  %v1295_v47 = vpop.permute.xlu1 %1294 }
 0x1f5   : > { %v1177_v63 = vadd.f32 %v1175_v9, %v1161_v60  ;;  %v1176_v46 = vadd.f32 %v1174_v53, %v1160_v30 }
 0x1f7   : > { %v1193_v58 = vadd.f32 %v1191_v55, %v1177_v63  ;;  %v1192_v57 = vadd.f32 %v1190_v61, %v1176_v46  ;;  %v1314_v51 = vpop.permute.xlu1 %1313 }
 0x1f8   : > { %v1319_v59 = vrot.slane %v1314_v51, %v1806_v52 }
 0x1f9   : > { %v1209_v13 = vadd.f32 %v1207_v34, %v1193_v58  ;;  %v1208_v50 = vadd.f32 %v1206_v27, %v1192_v57 }
 0x1fb   : > { %v1225_v45 = vadd.f32 %v1223_v32, %v1209_v13  ;;  %v1224_v2 = vadd.f32 %v1222_v40, %v1208_v50 }
 0x1fd   : > { %v1241_v14 = vadd.f32 %v1239_v15, %v1225_v45  ;;  %v1240_v17 = vadd.f32 %v1238_v56, %v1224_v2 }
 0x1ff   : > { %v1257_v37 = vadd.f32 %v1255_v18, %v1241_v14  ;;  %v1256_v20 = vadd.f32 %v1254_v23, %v1240_v17 }
 0x201   : > { %v1273_v7 = vadd.f32 %v1271_v35, %v1257_v37  ;;  %v1272_v29 = vadd.f32 %v1270_v19, %v1256_v20 }
 0x203   : > { %v1288_v5 = vadd.f32 %v1286_v6, %v1272_v29  ;;  %v1289_v4 = vadd.f32 %v1287_v41, %v1273_v7 }
 0x205   : > { %v1290_v62 = vmax.f32 %v1288_v5, 0.0  ;;  %v1291_v49 = vmax.f32 %v1289_v4, 0.0 }
 0x207   : > { %v1302_v44 = vmul.f32 %v1295_v47, %v1290_v62  ;;  %v1303_v31 = vmul.f32 %v1300_v11, %v1291_v49 }
 0x209   : > { %v1304_v10 = vadd.f32 %v1303_v31, %v1302_v44 }
 0x20b   : > { %v1305_v54 = vrot.slane %v1304_v10, 4 }
 0x20d   : > { %v1306_v48 = vadd.f32 %v1305_v54, %v1304_v10 }
 0x20f   : > { %v1307_v1 = vrot.slane %v1306_v48, 2 }
 0x211   : > { %v1308_v22 = vadd.f32 %v1307_v1, %v1306_v48 }
 0x213   : > { %v1309_v12 = vrot.slane %v1308_v22, 1 }
 0x215   : > { %v1310_v24 = vadd.f32 %v1309_v12, %v1308_v22 }
 0x217   : > { %v1320_v26 = vadd.f32 %v1319_v59, %v1310_v24 }
 0x219   : > { %1321 = vst [vmem:[%s349_s25] sm:$0x1] %v1320_v26 }
 0x21a PF: > { %s23_s17 = sadd.s32 1, %s1521_s17  }
 0x21b   : > { %p20_p6 = scmp.ge.s32.totalorder %s23_s17, 4  }
 0x21d   :  { %22 = sbr.rel (!%p20_p6) target bundleno = 3 (0x3), region = 86 }

</bundles_post_ra>
